<compile_context>
chip_gen: v7x
topology: tpu7x:2x2x1
jax: 0.10.0
libtpu: 0.0.40
codegen_flags: <defaults>
</compile_context>

<pallas_src>
import jax
import jax.numpy as jnp
from jax import lax
from jax.experimental import pallas as pl
from jax.experimental.pallas import tpu as pltpu


def _round_up(x, m):
    return ((x + m - 1) // m) * m


def _crf_kernel(em_ref, tg_ref, ln_ref, start_ref, end_ref, transt_ref, out_ref,
                score_s, num_s, prev_oh_s, last_oh_s):
    # em_ref   : (TC, K, TB)      emissions chunk, K on sublanes, batch on lanes
    # tg_ref   : (TC, 1, TB) i32  tags chunk (lane-dense)
    # ln_ref   : (1, TB)     i32  per-sequence valid length (contiguous prefix)
    # start_ref, end_ref : (K, 1) f32      transt_ref : (K, K) f32  = transitions.T
    # out_ref  : (1, TB)  per-sequence log-likelihood (written on last time chunk)
    TC, K, TB = em_ref.shape
    ti = pl.program_id(1)
    nt = pl.num_programs(1)

    # ---- hoisted per-invocation constants (outside the time loop) --------------
    trans_t = transt_ref[...]                            # (K_next, K_prev)
    c = jnp.max(trans_t)                                 # scalar shift for exp stability
    exp_trans_t = jnp.exp(trans_t - c)                   # (K_next, K_prev), in (0, 1]
    lengths = ln_ref[...]                                # (1, TB) int32

    row_iota = lax.broadcasted_iota(jnp.int32, (K, TB), 0)

    def one_hot(tag_row):                                # (1, TB) i32 -> (K, TB) f32
        return (row_iota == tag_row).astype(jnp.float32)

    # ---- init recursion state at global t == 0 (first time chunk of each tile) --
    @pl.when(ti == 0)
    def _():
        oh0 = one_hot(tg_ref[0])                         # (K, TB)
        s0 = start_ref[...] + em_ref[0].astype(jnp.float32)   # start + emissions[0]
        num_s[...] = jnp.sum(s0 * oh0, axis=0, keepdims=True)  # (1, TB)
        score_s[...] = s0
        prev_oh_s[...] = oh0
        last_oh_s[...] = oh0

    score = score_s[...]                                 # (K, TB) forward log-alpha
    num = num_s[...]                                     # (1, TB) gold-path score
    prev_oh = prev_oh_s[...]                             # (K, TB)
    last_oh = last_oh_s[...]                             # (K, TB)

    # ---- fused numerator + denominator recursion over the local time chunk ------
    def step(t, carry):
        score, num, prev_oh, last_oh = carry
        t_glob = ti * TC + t
        # global step 0 is consumed by the init above; steps >= length are padding
        keep = jnp.logical_and(t_glob >= 1, t_glob < lengths)     # (1, TB) bool
        m_t = keep.astype(jnp.float32)
        em_t = em_ref[t].astype(jnp.float32)                      # (K, TB)
        cur_oh = one_hot(tg_ref[t])                               # (K, TB)

        # numerator: transitions[tags[t-1], tags[t]] + emissions[t, tags[t]]
        # transition row select on the MXU: (K,K) @ (K,TB)
        trans_sel = jnp.dot(trans_t, prev_oh,
                            preferred_element_type=jnp.float32,
                            precision=jax.lax.Precision.HIGHEST)   # (K, TB)
        gold = jnp.sum((trans_sel + em_t) * cur_oh, axis=0, keepdims=True)  # (1, TB)
        num = num + gold * m_t

        # denominator: score'_k = em_k + logsumexp_j(score_j + trans_jk)
        #   = em_k + log( sum_j exp(trans_jk - c) * exp(score_j - m) ) + m + c
        m = jnp.max(score, axis=0, keepdims=True)                  # (1, TB)
        s_exp = jnp.exp(score - m)                                 # (K, TB)
        core = jnp.dot(exp_trans_t, s_exp,
                       preferred_element_type=jnp.float32,
                       precision=jax.lax.Precision.HIGHEST)        # (K, TB)
        nxt = jnp.log(core) + (m + c) + em_t                       # (K, TB)

        score = jnp.where(keep, nxt, score)
        last_oh = jnp.where(keep, cur_oh, last_oh)
        prev_oh = cur_oh
        return (score, num, prev_oh, last_oh)

    score, num, prev_oh, last_oh = lax.fori_loop(
        0, TC, step, (score, num, prev_oh, last_oh), unroll=4)

    # carry state to the next time chunk
    score_s[...] = score
    num_s[...] = num
    prev_oh_s[...] = prev_oh
    last_oh_s[...] = last_oh

    # ---- finalize at the last time chunk: add end transitions, final logsumexp --
    @pl.when(ti == nt - 1)
    def _():
        end = end_ref[...]                                                    # (K, 1)
        gold = num + jnp.sum(last_oh * end, axis=0, keepdims=True)            # (1, TB)
        fin = score + end                                                     # (K, TB)
        fmax = jnp.max(fin, axis=0, keepdims=True)
        den = jnp.log(jnp.sum(jnp.exp(fin - fmax), axis=0, keepdims=True)) + fmax
        out_ref[...] = gold - den                                             # (1, TB)


def crf_forward(emissions, tags, mask, start_transitions, end_transitions,
                transitions, *, batch_first=True, reduction="sum",
                time_chunk=128, batch_tile=None, emissions_dtype=jnp.float32):
    """JAX/Pallas equivalent of CRF.forward (sequence log-likelihood)."""
    if reduction not in ("none", "sum", "mean", "token_mean"):
        raise ValueError(f"invalid reduction: {reduction}")
    if emissions.ndim != 3:
        raise ValueError(f"emissions must have dimension of 3, got {emissions.ndim}")
    K = transitions.shape[0]
    if emissions.shape[-1] != K:
        raise ValueError(f"expected last dimension of emissions is {K}, got {emissions.shape[-1]}")
    if mask is None:
        mask = jnp.ones(tags.shape, dtype=jnp.uint8)
    if emissions.shape[:2] != tags.shape or emissions.shape[:2] != mask.shape:
        raise ValueError("the first two dimensions of emissions, tags and mask must match")

    # Mask enters the kernel only as per-sequence lengths (drops a whole (T, B)
    # HBM stream).  Assumes (like torchcrf) contiguous-prefix masks with the first
    # timestep on.
    time_axis = 1 if batch_first else 0
    lengths = jnp.sum(mask.astype(jnp.int32), axis=time_axis)      # (B,)
    mask_total = jnp.sum(mask.astype(jnp.float32))

    # Internal layout: time-major, K on sublanes, batch on lanes.
    # TODO(synk): fold this transpose into the kernel (accept (TB, TC, K) blocks +
    # an XLU chunk transpose) to remove the pre-kernel HBM round-trip on v5e.
    if batch_first:
        em = jnp.transpose(emissions, (1, 2, 0))   # (B,T,K) -> (T, K, B)
        tg = jnp.transpose(tags, (1, 0))           # (T, B)
    else:
        em = jnp.transpose(emissions, (0, 2, 1))   # (T,B,K) -> (T, K, B)
        tg = tags

    T, _, B = em.shape

    # ---- tile sizing -----------------------------------------------------------
    if batch_tile is None:
        b128 = _round_up(B, 128)
        if b128 <= 128:
            TB = 128
        else:
            # keep >= 2 batch tiles (v7x has 2 TensorCores), <= 512 lanes per tile
            TB = min(512, max(128, _round_up(b128 // 2, 128)))
    else:
        if batch_tile % 128 != 0:
            raise ValueError("batch_tile must be a multiple of 128 (lane width)")
        TB = int(batch_tile)

    em_bytes = jnp.dtype(emissions_dtype).itemsize
    TC = max(1, min(int(time_chunk), T))
    # Clamp so double-buffered emission chunks stay <= ~8 MiB (v7x-safe).
    tc_cap = max(1, (8 << 20) // (2 * K * TB * em_bytes))
    TC = min(TC, tc_cap)

    B_pad = _round_up(B, TB)
    T_pad = _round_up(T, TC)

    em = em.astype(emissions_dtype)
    tg3 = tg.astype(jnp.int32)[:, None, :]         # (T, 1, B)
    em = jnp.pad(em, ((0, T_pad - T), (0, 0), (0, B_pad - B)))
    tg3 = jnp.pad(tg3, ((0, T_pad - T), (0, 0), (0, B_pad - B)))
    ln2 = jnp.pad(lengths.astype(jnp.int32)[None, :], ((0, 0), (0, B_pad - B)))  # (1, B_pad)

    start = start_transitions.astype(jnp.float32).reshape(K, 1)
    end = end_transitions.astype(jnp.float32).reshape(K, 1)
    trans_t = jnp.transpose(transitions.astype(jnp.float32))        # (K_next, K_prev)

    grid = (B_pad // TB, T_pad // TC)              # (parallel batch tiles, streamed time)

    # VMEM budget: double-buffered streamed chunks + params + carried scratch, with
    # headroom.  Explicit so the kernel also respects v7x's smaller (64 MiB) VMEM.
    block_bytes = 2 * (TC * K * TB * em_bytes + TC * TB * 4 + TB * 4)   # em + tags + lengths
    block_bytes += 2 * ((K * K + 2 * K) * 4 + TB * 4)                   # params + output
    block_bytes += (3 * K + 1) * TB * 4                                 # carried scratch
    vmem_limit = int(min(max(4 * block_bytes, 16 << 20), 32 << 20))

    out = pl.pallas_call(
        _crf_kernel,
        out_shape=jax.ShapeDtypeStruct((1, B_pad), jnp.float32),
        grid_spec=pltpu.PrefetchScalarGridSpec(
            num_scalar_prefetch=0,
            grid=grid,
            in_specs=[
                pl.BlockSpec((TC, K, TB), lambda bi, ti: (ti, 0, bi)),   # emissions
                pl.BlockSpec((TC, 1, TB), lambda bi, ti: (ti, 0, bi)),   # tags
                pl.BlockSpec((1, TB), lambda bi, ti: (0, bi)),           # lengths
                pl.BlockSpec((K, 1), lambda bi, ti: (0, 0)),             # start
                pl.BlockSpec((K, 1), lambda bi, ti: (0, 0)),             # end
                pl.BlockSpec((K, K), lambda bi, ti: (0, 0)),             # transitions.T
            ],
            out_specs=pl.BlockSpec((1, TB), lambda bi, ti: (0, bi)),
            scratch_shapes=[
                pltpu.VMEM((K, TB), jnp.float32),   # forward log-alpha
                pltpu.VMEM((1, TB), jnp.float32),   # gold-path score (numerator)
                pltpu.VMEM((K, TB), jnp.float32),   # one-hot of previous tag
                pltpu.VMEM((K, TB), jnp.float32),   # one-hot of last valid tag
            ]),
        compiler_params=pltpu.CompilerParams(
            dimension_semantics=("parallel", "arbitrary"),
            vmem_limit_bytes=vmem_limit),
    )(em, tg3, ln2, start, end, trans_t)

    llh = out[0, :B]                               # (B,)

    if reduction == "none":
        return llh
    if reduction == "sum":
        return jnp.sum(llh)
    if reduction == "mean":
        return jnp.mean(llh)
    return jnp.sum(llh) / mask_total               # token_mean


# ---------------- pure-JAX reference (mirrors the torch code) ----------------
def crf_reference(emissions, tags, mask, start, end, trans, reduction="sum"):
    em = jnp.transpose(emissions, (1, 0, 2)).astype(jnp.float32)
    tg = jnp.transpose(tags, (1, 0)).astype(jnp.int32)
    mk = jnp.transpose(mask, (1, 0)).astype(jnp.float32)
    T, B, K = em.shape

    score = start[tg[0]] + em[0, jnp.arange(B), tg[0]]
    for i in range(1, T):
        score = score + trans[tg[i - 1], tg[i]] * mk[i]
        score = score + em[i, jnp.arange(B), tg[i]] * mk[i]
    seq_ends = mk.sum(0).astype(jnp.int32) - 1
    last_tags = tg[seq_ends, jnp.arange(B)]
    score = score + end[last_tags]

    z = start[None, :] + em[0]
    for i in range(1, T):
        nxt = z[:, :, None] + trans[None, :, :] + em[i][:, None, :]
        nxt = jax.nn.logsumexp(nxt, axis=1)
        z = jnp.where(mk[i][:, None] > 0, nxt, z)
    den = jax.nn.logsumexp(z + end[None, :], axis=1)

    llh = score - den
    if reduction == "sum":
        return jnp.sum(llh)
    return llh


if __name__ == "__main__":
    # TODO(synk): CRF.decode (Viterbi backtracking into per-sequence Python lists) is
    # host-side control flow and is not implemented as a kernel.
    B, T, K = 4, 10, 8  # batch, seq_length, num_tags

    key = jax.random.PRNGKey(0)
    k_em, k_tag, k_s, k_e, k_t = jax.random.split(key, 5)

    emissions = jax.random.normal(k_em, (B, T, K), dtype=jnp.float32)
    tags = jax.random.randint(k_tag, (B, T), 0, K, dtype=jnp.int32)

    # mask: first timestep all on; variable sequence lengths (contiguous prefixes)
    lengths = jnp.array([10, 7, 4, 1], dtype=jnp.int32)
    mask = (jnp.arange(T)[None, :] < lengths[:, None]).astype(jnp.uint8)   # (B, T)

    # CRF parameters: uniform(-0.1, 0.1), deterministic
    start_transitions = jax.random.uniform(k_s, (K,), minval=-0.1, maxval=0.1, dtype=jnp.float32)
    end_transitions = jax.random.uniform(k_e, (K,), minval=-0.1, maxval=0.1, dtype=jnp.float32)
    transitions = jax.random.uniform(k_t, (K, K), minval=-0.1, maxval=0.1, dtype=jnp.float32)

    # small time_chunk so the test exercises cross-chunk state carry and T padding
    out = crf_forward(emissions, tags, mask, start_transitions, end_transitions,
                      transitions, batch_first=True, reduction="sum", time_chunk=4)
    out = jax.block_until_ready(out)
    ref = crf_reference(emissions, tags, mask, start_transitions, end_transitions,
                        transitions, reduction="sum")
    assert jnp.allclose(out, ref, rtol=1e-4, atol=1e-4), (out, ref)

    out_n = crf_forward(emissions, tags, mask, start_transitions, end_transitions,
                        transitions, batch_first=True, reduction="none", time_chunk=4)
    out_n = jax.block_until_ready(out_n)
    ref_n = crf_reference(emissions, tags, mask, start_transitions, end_transitions,
                          transitions, reduction="none")
    assert jnp.allclose(out_n, ref_n, rtol=1e-4, atol=1e-4), (out_n, ref_n)

    print("KERNEL_OK")
</pallas_src>

<mosaic_0001>
module attributes {stable_mosaic.version = 11 : i64} {
  func.func @_crf_kernel(%arg0: i32, %arg1: i32, %arg2: memref<4x8x128xf32, #tpu.memory_space<vmem>>, %arg3: memref<4x1x128xi32, #tpu.memory_space<vmem>>, %arg4: memref<1x128xi32, #tpu.memory_space<vmem>>, %arg5: memref<8x1xf32, #tpu.memory_space<vmem>>, %arg6: memref<8x1xf32, #tpu.memory_space<vmem>>, %arg7: memref<8x8xf32, #tpu.memory_space<vmem>>, %arg8: memref<1x128xf32, #tpu.memory_space<vmem>>, %arg9: memref<8x128xf32, #tpu.memory_space<vmem>>, %arg10: memref<1x128xf32, #tpu.memory_space<vmem>>, %arg11: memref<8x128xf32, #tpu.memory_space<vmem>>, %arg12: memref<8x128xf32, #tpu.memory_space<vmem>>) attributes {dimension_semantics = [#tpu.dimension_semantics<parallel>, #tpu.dimension_semantics<arbitrary>], iteration_bounds = array<i64: 1, 3>, scalar_prefetch = 0 : i64, scratch_operands = 4 : i64, tpu.core_type = #tpu.core_type<tc>, window_params = [{transform_indices = @transform_0, window_bounds = array<i64: 4, 8, 128>}, {transform_indices = @transform_1, window_bounds = array<i64: 4, 1, 128>}, {transform_indices = @transform_2, window_bounds = array<i64: 1, 128>}, {pipeline_mode = #tpu.pipeline_mode<synchronous>, transform_indices = @transform_3, window_bounds = array<i64: 8, 1>}, {pipeline_mode = #tpu.pipeline_mode<synchronous>, transform_indices = @transform_4, window_bounds = array<i64: 8, 1>}, {pipeline_mode = #tpu.pipeline_mode<synchronous>, transform_indices = @transform_5, window_bounds = array<i64: 8, 8>}, {transform_indices = @transform_6, window_bounds = array<i64: 1, 128>}]} {
    %c0 = arith.constant 0 : index
    %c0_0 = arith.constant 0 : index
    %0 = vector.load %arg7[%c0, %c0_0] : memref<8x8xf32, #tpu.memory_space<vmem>>, vector<8x8xf32>
    %1 = vector.shape_cast %0 : vector<8x8xf32> to vector<1x8x8xf32>
    %cst = arith.constant dense<0xFF800000> : vector<1xf32>
    %2 = vector.multi_reduction <maximumf>, %1, %cst [1, 2] : vector<1x8x8xf32> to vector<1xf32>
    %3 = vector.shape_cast %2 : vector<1xf32> to vector<1x1x1xf32>
    %4 = vector.extract %3[0, 0, 0] : f32 from vector<1x1x1xf32>
    %5 = vector.broadcast %4 : f32 to vector<8x8xf32>
    %6 = arith.subf %0, %5 : vector<8x8xf32>
    %7 = math.exp %6 : vector<8x8xf32>
    %c0_1 = arith.constant 0 : index
    %c0_2 = arith.constant 0 : index
    %8 = vector.load %arg4[%c0_1, %c0_2] : memref<1x128xi32, #tpu.memory_space<vmem>>, vector<1x128xi32>
    %9 = tpu.iota {dimensions = array<i32: 0>} : vector<8x128xi32>
    %c0_i32 = arith.constant 0 : i32
    %10 = arith.cmpi eq, %arg1, %c0_i32 : i32
    %11 = arith.extui %10 : i1 to i32
    %c0_i32_3 = arith.constant 0 : i32
    %12 = arith.cmpi ne, %11, %c0_i32_3 : i32
    scf.if %12 {
      %c0_63 = arith.constant 0 : index
      %c0_64 = arith.constant 0 : index
      %c0_65 = arith.constant 0 : index
      %200 = vector.load %arg3[%c0_63, %c0_64, %c0_65] : memref<4x1x128xi32, #tpu.memory_space<vmem>>, vector<1x1x128xi32>
      %201 = vector.shape_cast %200 : vector<1x1x128xi32> to vector<1x128xi32>
      %202 = vector.broadcast %201 : vector<1x128xi32> to vector<8x128xi32>
      %203 = arith.cmpi eq, %9, %202 : vector<8x128xi32>
      %204 = arith.extui %203 : vector<8x128xi1> to vector<8x128xi32>
      %205 = arith.sitofp %204 : vector<8x128xi32> to vector<8x128xf32>
      %c0_66 = arith.constant 0 : index
      %c0_67 = arith.constant 0 : index
      %206 = vector.load %arg5[%c0_66, %c0_67] : memref<8x1xf32, #tpu.memory_space<vmem>>, vector<8x1xf32>
      %c0_68 = arith.constant 0 : index
      %c0_69 = arith.constant 0 : index
      %c0_70 = arith.constant 0 : index
      %207 = vector.load %arg2[%c0_68, %c0_69, %c0_70] : memref<4x8x128xf32, #tpu.memory_space<vmem>>, vector<1x8x128xf32>
      %208 = vector.shape_cast %207 : vector<1x8x128xf32> to vector<8x128xf32>
      %209 = vector.broadcast %206 : vector<8x1xf32> to vector<8x128xf32>
      %210 = arith.addf %209, %208 : vector<8x128xf32>
      %211 = arith.mulf %210, %205 : vector<8x128xf32>
      %cst_71 = arith.constant dense<0.000000e+00> : vector<128xf32>
      %212 = vector.multi_reduction <add>, %211, %cst_71 [0] : vector<8x128xf32> to vector<128xf32>
      %213 = vector.shape_cast %212 : vector<128xf32> to vector<1x128xf32>
      %c0_72 = arith.constant 0 : index
      %c0_73 = arith.constant 0 : index
      %214 = vector.load %arg10[%c0_72, %c0_73] : memref<1x128xf32, #tpu.memory_space<vmem>>, vector<1x128xf32>
      tpu.vector_store %arg10[%c0_72, %c0_73], %213 {strides = array<i32>} : memref<1x128xf32, #tpu.memory_space<vmem>>, vector<1x128xf32>,
      %c0_74 = arith.constant 0 : index
      %c0_75 = arith.constant 0 : index
      %215 = vector.load %arg9[%c0_74, %c0_75] : memref<8x128xf32, #tpu.memory_space<vmem>>, vector<8x128xf32>
      tpu.vector_store %arg9[%c0_74, %c0_75], %210 {strides = array<i32>} : memref<8x128xf32, #tpu.memory_space<vmem>>, vector<8x128xf32>,
      %c0_76 = arith.constant 0 : index
      %c0_77 = arith.constant 0 : index
      %216 = vector.load %arg11[%c0_76, %c0_77] : memref<8x128xf32, #tpu.memory_space<vmem>>, vector<8x128xf32>
      tpu.vector_store %arg11[%c0_76, %c0_77], %205 {strides = array<i32>} : memref<8x128xf32, #tpu.memory_space<vmem>>, vector<8x128xf32>,
      %c0_78 = arith.constant 0 : index
      %c0_79 = arith.constant 0 : index
      %217 = vector.load %arg12[%c0_78, %c0_79] : memref<8x128xf32, #tpu.memory_space<vmem>>, vector<8x128xf32>
      tpu.vector_store %arg12[%c0_78, %c0_79], %205 {strides = array<i32>} : memref<8x128xf32, #tpu.memory_space<vmem>>, vector<8x128xf32>,
    } else {
    }
    %c0_4 = arith.constant 0 : index
    %c0_5 = arith.constant 0 : index
    %13 = vector.load %arg9[%c0_4, %c0_5] : memref<8x128xf32, #tpu.memory_space<vmem>>, vector<8x128xf32>
    %c0_6 = arith.constant 0 : index
    %c0_7 = arith.constant 0 : index
    %14 = vector.load %arg10[%c0_6, %c0_7] : memref<1x128xf32, #tpu.memory_space<vmem>>, vector<1x128xf32>
    %c0_8 = arith.constant 0 : index
    %c0_9 = arith.constant 0 : index
    %15 = vector.load %arg11[%c0_8, %c0_9] : memref<8x128xf32, #tpu.memory_space<vmem>>, vector<8x128xf32>
    %c0_10 = arith.constant 0 : index
    %c0_11 = arith.constant 0 : index
    %16 = vector.load %arg12[%c0_10, %c0_11] : memref<8x128xf32, #tpu.memory_space<vmem>>, vector<8x128xf32>
    %c0_i32_12 = arith.constant 0 : i32
    %c4_i32 = arith.constant 4 : i32
    %17 = arith.muli %arg1, %c4_i32 : i32
    %18 = arith.addi %17, %c0_i32_12 : i32
    %c1_i32 = arith.constant 1 : i32
    %19 = arith.cmpi sge, %18, %c1_i32 : i32
    %20 = vector.broadcast %18 : i32 to vector<1x128xi32>
    %21 = arith.cmpi slt, %20, %8 : vector<1x128xi32>
    %22 = vector.broadcast %19 : i1 to vector<1x128xi1>
    %23 = arith.andi %22, %21 : vector<1x128xi1>
    %24 = arith.extui %23 : vector<1x128xi1> to vector<1x128xi32>
    %25 = arith.sitofp %24 : vector<1x128xi32> to vector<1x128xf32>
    %26 = arith.index_cast %c0_i32_12 : i32 to index
    %c0_13 = arith.constant 0 : index
    %c0_14 = arith.constant 0 : index
    %27 = vector.load %arg2[%26, %c0_13, %c0_14] : memref<4x8x128xf32, #tpu.memory_space<vmem>>, vector<1x8x128xf32>
    %28 = vector.shape_cast %27 : vector<1x8x128xf32> to vector<8x128xf32>
    %29 = arith.index_cast %c0_i32_12 : i32 to index
    %c0_15 = arith.constant 0 : index
    %c0_16 = arith.constant 0 : index
    %30 = vector.load %arg3[%29, %c0_15, %c0_16] : memref<4x1x128xi32, #tpu.memory_space<vmem>>, vector<1x1x128xi32>
    %31 = vector.shape_cast %30 : vector<1x1x128xi32> to vector<1x128xi32>
    %32 = vector.broadcast %31 : vector<1x128xi32> to vector<8x128xi32>
    %33 = arith.cmpi eq, %9, %32 : vector<8x128xi32>
    %34 = arith.extui %33 : vector<8x128xi1> to vector<8x128xi32>
    %35 = arith.sitofp %34 : vector<8x128xi32> to vector<8x128xf32>
    %cst_17 = arith.constant dense<0.000000e+00> : vector<8x128xf32>
    %36 = tpu.matmul %0, %15, %cst_17 {dimension_numbers = #tpu.dot_dimension_numbers<[1], [0], [0], [1], [0, 0, 1, 1], [], []>, precision = #tpu.contract_precision<fp32>} : vector<8x8xf32>, vector<8x128xf32>, vector<8x128xf32> -> vector<8x128xf32>
    %37 = arith.addf %36, %28 : vector<8x128xf32>
    %38 = arith.mulf %37, %35 : vector<8x128xf32>
    %cst_18 = arith.constant dense<0.000000e+00> : vector<128xf32>
    %39 = vector.multi_reduction <add>, %38, %cst_18 [0] : vector<8x128xf32> to vector<128xf32>
    %40 = vector.shape_cast %39 : vector<128xf32> to vector<1x128xf32>
    %41 = arith.mulf %40, %25 : vector<1x128xf32>
    %42 = arith.addf %14, %41 : vector<1x128xf32>
    %cst_19 = arith.constant dense<0xFF800000> : vector<128xf32>
    %43 = vector.multi_reduction <maximumf>, %13, %cst_19 [0] : vector<8x128xf32> to vector<128xf32>
    %44 = vector.shape_cast %43 : vector<128xf32> to vector<1x128xf32>
    %45 = vector.broadcast %44 : vector<1x128xf32> to vector<8x128xf32>
    %46 = arith.subf %13, %45 : vector<8x128xf32>
    %47 = math.exp %46 : vector<8x128xf32>
    %cst_20 = arith.constant dense<0.000000e+00> : vector<8x128xf32>
    %48 = tpu.matmul %7, %47, %cst_20 {dimension_numbers = #tpu.dot_dimension_numbers<[1], [0], [0], [1], [0, 0, 1, 1], [], []>, precision = #tpu.contract_precision<fp32>} : vector<8x8xf32>, vector<8x128xf32>, vector<8x128xf32> -> vector<8x128xf32>
    %49 = math.log %48 : vector<8x128xf32>
    %50 = vector.broadcast %4 : f32 to vector<1x128xf32>
    %51 = arith.addf %44, %50 : vector<1x128xf32>
    %52 = vector.broadcast %51 : vector<1x128xf32> to vector<8x128xf32>
    %53 = arith.addf %49, %52 : vector<8x128xf32>
    %54 = arith.addf %53, %28 : vector<8x128xf32>
    %55 = vector.shape_cast %23 : vector<1x128xi1> to vector<1x128xi1>
    %56 = vector.broadcast %55 : vector<1x128xi1> to vector<8x128xi1>
    %57 = arith.select %56, %54, %13 : vector<8x128xi1>, vector<8x128xf32>
    %58 = vector.shape_cast %23 : vector<1x128xi1> to vector<1x128xi1>
    %59 = vector.broadcast %58 : vector<1x128xi1> to vector<8x128xi1>
    %60 = arith.select %59, %35, %16 : vector<8x128xi1>, vector<8x128xf32>
    %c1_i32_21 = arith.constant 1 : i32
    %c4_i32_22 = arith.constant 4 : i32
    %61 = arith.muli %arg1, %c4_i32_22 : i32
    %62 = arith.addi %61, %c1_i32_21 : i32
    %c1_i32_23 = arith.constant 1 : i32
    %63 = arith.cmpi sge, %62, %c1_i32_23 : i32
    %64 = vector.broadcast %62 : i32 to vector<1x128xi32>
    %65 = arith.cmpi slt, %64, %8 : vector<1x128xi32>
    %66 = vector.broadcast %63 : i1 to vector<1x128xi1>
    %67 = arith.andi %66, %65 : vector<1x128xi1>
    %68 = arith.extui %67 : vector<1x128xi1> to vector<1x128xi32>
    %69 = arith.sitofp %68 : vector<1x128xi32> to vector<1x128xf32>
    %70 = arith.index_cast %c1_i32_21 : i32 to index
    %c0_24 = arith.constant 0 : index
    %c0_25 = arith.constant 0 : index
    %71 = vector.load %arg2[%70, %c0_24, %c0_25] : memref<4x8x128xf32, #tpu.memory_space<vmem>>, vector<1x8x128xf32>
    %72 = vector.shape_cast %71 : vector<1x8x128xf32> to vector<8x128xf32>
    %73 = arith.index_cast %c1_i32_21 : i32 to index
    %c0_26 = arith.constant 0 : index
    %c0_27 = arith.constant 0 : index
    %74 = vector.load %arg3[%73, %c0_26, %c0_27] : memref<4x1x128xi32, #tpu.memory_space<vmem>>, vector<1x1x128xi32>
    %75 = vector.shape_cast %74 : vector<1x1x128xi32> to vector<1x128xi32>
    %76 = vector.broadcast %75 : vector<1x128xi32> to vector<8x128xi32>
    %77 = arith.cmpi eq, %9, %76 : vector<8x128xi32>
    %78 = arith.extui %77 : vector<8x128xi1> to vector<8x128xi32>
    %79 = arith.sitofp %78 : vector<8x128xi32> to vector<8x128xf32>
    %cst_28 = arith.constant dense<0.000000e+00> : vector<8x128xf32>
    %80 = tpu.matmul %0, %35, %cst_28 {dimension_numbers = #tpu.dot_dimension_numbers<[1], [0], [0], [1], [0, 0, 1, 1], [], []>, precision = #tpu.contract_precision<fp32>} : vector<8x8xf32>, vector<8x128xf32>, vector<8x128xf32> -> vector<8x128xf32>
    %81 = arith.addf %80, %72 : vector<8x128xf32>
    %82 = arith.mulf %81, %79 : vector<8x128xf32>
    %cst_29 = arith.constant dense<0.000000e+00> : vector<128xf32>
    %83 = vector.multi_reduction <add>, %82, %cst_29 [0] : vector<8x128xf32> to vector<128xf32>
    %84 = vector.shape_cast %83 : vector<128xf32> to vector<1x128xf32>
    %85 = arith.mulf %84, %69 : vector<1x128xf32>
    %86 = arith.addf %42, %85 : vector<1x128xf32>
    %cst_30 = arith.constant dense<0xFF800000> : vector<128xf32>
    %87 = vector.multi_reduction <maximumf>, %57, %cst_30 [0] : vector<8x128xf32> to vector<128xf32>
    %88 = vector.shape_cast %87 : vector<128xf32> to vector<1x128xf32>
    %89 = vector.broadcast %88 : vector<1x128xf32> to vector<8x128xf32>
    %90 = arith.subf %57, %89 : vector<8x128xf32>
    %91 = math.exp %90 : vector<8x128xf32>
    %cst_31 = arith.constant dense<0.000000e+00> : vector<8x128xf32>
    %92 = tpu.matmul %7, %91, %cst_31 {dimension_numbers = #tpu.dot_dimension_numbers<[1], [0], [0], [1], [0, 0, 1, 1], [], []>, precision = #tpu.contract_precision<fp32>} : vector<8x8xf32>, vector<8x128xf32>, vector<8x128xf32> -> vector<8x128xf32>
    %93 = math.log %92 : vector<8x128xf32>
    %94 = vector.broadcast %4 : f32 to vector<1x128xf32>
    %95 = arith.addf %88, %94 : vector<1x128xf32>
    %96 = vector.broadcast %95 : vector<1x128xf32> to vector<8x128xf32>
    %97 = arith.addf %93, %96 : vector<8x128xf32>
    %98 = arith.addf %97, %72 : vector<8x128xf32>
    %99 = vector.shape_cast %67 : vector<1x128xi1> to vector<1x128xi1>
    %100 = vector.broadcast %99 : vector<1x128xi1> to vector<8x128xi1>
    %101 = arith.select %100, %98, %57 : vector<8x128xi1>, vector<8x128xf32>
    %102 = vector.shape_cast %67 : vector<1x128xi1> to vector<1x128xi1>
    %103 = vector.broadcast %102 : vector<1x128xi1> to vector<8x128xi1>
    %104 = arith.select %103, %79, %60 : vector<8x128xi1>, vector<8x128xf32>
    %c2_i32 = arith.constant 2 : i32
    %c4_i32_32 = arith.constant 4 : i32
    %105 = arith.muli %arg1, %c4_i32_32 : i32
    %106 = arith.addi %105, %c2_i32 : i32
    %c1_i32_33 = arith.constant 1 : i32
    %107 = arith.cmpi sge, %106, %c1_i32_33 : i32
    %108 = vector.broadcast %106 : i32 to vector<1x128xi32>
    %109 = arith.cmpi slt, %108, %8 : vector<1x128xi32>
    %110 = vector.broadcast %107 : i1 to vector<1x128xi1>
    %111 = arith.andi %110, %109 : vector<1x128xi1>
    %112 = arith.extui %111 : vector<1x128xi1> to vector<1x128xi32>
    %113 = arith.sitofp %112 : vector<1x128xi32> to vector<1x128xf32>
    %114 = arith.index_cast %c2_i32 : i32 to index
    %c0_34 = arith.constant 0 : index
    %c0_35 = arith.constant 0 : index
    %115 = vector.load %arg2[%114, %c0_34, %c0_35] : memref<4x8x128xf32, #tpu.memory_space<vmem>>, vector<1x8x128xf32>
    %116 = vector.shape_cast %115 : vector<1x8x128xf32> to vector<8x128xf32>
    %117 = arith.index_cast %c2_i32 : i32 to index
    %c0_36 = arith.constant 0 : index
    %c0_37 = arith.constant 0 : index
    %118 = vector.load %arg3[%117, %c0_36, %c0_37] : memref<4x1x128xi32, #tpu.memory_space<vmem>>, vector<1x1x128xi32>
    %119 = vector.shape_cast %118 : vector<1x1x128xi32> to vector<1x128xi32>
    %120 = vector.broadcast %119 : vector<1x128xi32> to vector<8x128xi32>
    %121 = arith.cmpi eq, %9, %120 : vector<8x128xi32>
    %122 = arith.extui %121 : vector<8x128xi1> to vector<8x128xi32>
    %123 = arith.sitofp %122 : vector<8x128xi32> to vector<8x128xf32>
    %cst_38 = arith.constant dense<0.000000e+00> : vector<8x128xf32>
    %124 = tpu.matmul %0, %79, %cst_38 {dimension_numbers = #tpu.dot_dimension_numbers<[1], [0], [0], [1], [0, 0, 1, 1], [], []>, precision = #tpu.contract_precision<fp32>} : vector<8x8xf32>, vector<8x128xf32>, vector<8x128xf32> -> vector<8x128xf32>
    %125 = arith.addf %124, %116 : vector<8x128xf32>
    %126 = arith.mulf %125, %123 : vector<8x128xf32>
    %cst_39 = arith.constant dense<0.000000e+00> : vector<128xf32>
    %127 = vector.multi_reduction <add>, %126, %cst_39 [0] : vector<8x128xf32> to vector<128xf32>
    %128 = vector.shape_cast %127 : vector<128xf32> to vector<1x128xf32>
    %129 = arith.mulf %128, %113 : vector<1x128xf32>
    %130 = arith.addf %86, %129 : vector<1x128xf32>
    %cst_40 = arith.constant dense<0xFF800000> : vector<128xf32>
    %131 = vector.multi_reduction <maximumf>, %101, %cst_40 [0] : vector<8x128xf32> to vector<128xf32>
    %132 = vector.shape_cast %131 : vector<128xf32> to vector<1x128xf32>
    %133 = vector.broadcast %132 : vector<1x128xf32> to vector<8x128xf32>
    %134 = arith.subf %101, %133 : vector<8x128xf32>
    %135 = math.exp %134 : vector<8x128xf32>
    %cst_41 = arith.constant dense<0.000000e+00> : vector<8x128xf32>
    %136 = tpu.matmul %7, %135, %cst_41 {dimension_numbers = #tpu.dot_dimension_numbers<[1], [0], [0], [1], [0, 0, 1, 1], [], []>, precision = #tpu.contract_precision<fp32>} : vector<8x8xf32>, vector<8x128xf32>, vector<8x128xf32> -> vector<8x128xf32>
    %137 = math.log %136 : vector<8x128xf32>
    %138 = vector.broadcast %4 : f32 to vector<1x128xf32>
    %139 = arith.addf %132, %138 : vector<1x128xf32>
    %140 = vector.broadcast %139 : vector<1x128xf32> to vector<8x128xf32>
    %141 = arith.addf %137, %140 : vector<8x128xf32>
    %142 = arith.addf %141, %116 : vector<8x128xf32>
    %143 = vector.shape_cast %111 : vector<1x128xi1> to vector<1x128xi1>
    %144 = vector.broadcast %143 : vector<1x128xi1> to vector<8x128xi1>
    %145 = arith.select %144, %142, %101 : vector<8x128xi1>, vector<8x128xf32>
    %146 = vector.shape_cast %111 : vector<1x128xi1> to vector<1x128xi1>
    %147 = vector.broadcast %146 : vector<1x128xi1> to vector<8x128xi1>
    %148 = arith.select %147, %123, %104 : vector<8x128xi1>, vector<8x128xf32>
    %c3_i32 = arith.constant 3 : i32
    %c4_i32_42 = arith.constant 4 : i32
    %149 = arith.muli %arg1, %c4_i32_42 : i32
    %150 = arith.addi %149, %c3_i32 : i32
    %c1_i32_43 = arith.constant 1 : i32
    %151 = arith.cmpi sge, %150, %c1_i32_43 : i32
    %152 = vector.broadcast %150 : i32 to vector<1x128xi32>
    %153 = arith.cmpi slt, %152, %8 : vector<1x128xi32>
    %154 = vector.broadcast %151 : i1 to vector<1x128xi1>
    %155 = arith.andi %154, %153 : vector<1x128xi1>
    %156 = arith.extui %155 : vector<1x128xi1> to vector<1x128xi32>
    %157 = arith.sitofp %156 : vector<1x128xi32> to vector<1x128xf32>
    %158 = arith.index_cast %c3_i32 : i32 to index
    %c0_44 = arith.constant 0 : index
    %c0_45 = arith.constant 0 : index
    %159 = vector.load %arg2[%158, %c0_44, %c0_45] : memref<4x8x128xf32, #tpu.memory_space<vmem>>, vector<1x8x128xf32>
    %160 = vector.shape_cast %159 : vector<1x8x128xf32> to vector<8x128xf32>
    %161 = arith.index_cast %c3_i32 : i32 to index
    %c0_46 = arith.constant 0 : index
    %c0_47 = arith.constant 0 : index
    %162 = vector.load %arg3[%161, %c0_46, %c0_47] : memref<4x1x128xi32, #tpu.memory_space<vmem>>, vector<1x1x128xi32>
    %163 = vector.shape_cast %162 : vector<1x1x128xi32> to vector<1x128xi32>
    %164 = vector.broadcast %163 : vector<1x128xi32> to vector<8x128xi32>
    %165 = arith.cmpi eq, %9, %164 : vector<8x128xi32>
    %166 = arith.extui %165 : vector<8x128xi1> to vector<8x128xi32>
    %167 = arith.sitofp %166 : vector<8x128xi32> to vector<8x128xf32>
    %cst_48 = arith.constant dense<0.000000e+00> : vector<8x128xf32>
    %168 = tpu.matmul %0, %123, %cst_48 {dimension_numbers = #tpu.dot_dimension_numbers<[1], [0], [0], [1], [0, 0, 1, 1], [], []>, precision = #tpu.contract_precision<fp32>} : vector<8x8xf32>, vector<8x128xf32>, vector<8x128xf32> -> vector<8x128xf32>
    %169 = arith.addf %168, %160 : vector<8x128xf32>
    %170 = arith.mulf %169, %167 : vector<8x128xf32>
    %cst_49 = arith.constant dense<0.000000e+00> : vector<128xf32>
    %171 = vector.multi_reduction <add>, %170, %cst_49 [0] : vector<8x128xf32> to vector<128xf32>
    %172 = vector.shape_cast %171 : vector<128xf32> to vector<1x128xf32>
    %173 = arith.mulf %172, %157 : vector<1x128xf32>
    %174 = arith.addf %130, %173 : vector<1x128xf32>
    %cst_50 = arith.constant dense<0xFF800000> : vector<128xf32>
    %175 = vector.multi_reduction <maximumf>, %145, %cst_50 [0] : vector<8x128xf32> to vector<128xf32>
    %176 = vector.shape_cast %175 : vector<128xf32> to vector<1x128xf32>
    %177 = vector.broadcast %176 : vector<1x128xf32> to vector<8x128xf32>
    %178 = arith.subf %145, %177 : vector<8x128xf32>
    %179 = math.exp %178 : vector<8x128xf32>
    %cst_51 = arith.constant dense<0.000000e+00> : vector<8x128xf32>
    %180 = tpu.matmul %7, %179, %cst_51 {dimension_numbers = #tpu.dot_dimension_numbers<[1], [0], [0], [1], [0, 0, 1, 1], [], []>, precision = #tpu.contract_precision<fp32>} : vector<8x8xf32>, vector<8x128xf32>, vector<8x128xf32> -> vector<8x128xf32>
    %181 = math.log %180 : vector<8x128xf32>
    %182 = vector.broadcast %4 : f32 to vector<1x128xf32>
    %183 = arith.addf %176, %182 : vector<1x128xf32>
    %184 = vector.broadcast %183 : vector<1x128xf32> to vector<8x128xf32>
    %185 = arith.addf %181, %184 : vector<8x128xf32>
    %186 = arith.addf %185, %160 : vector<8x128xf32>
    %187 = vector.shape_cast %155 : vector<1x128xi1> to vector<1x128xi1>
    %188 = vector.broadcast %187 : vector<1x128xi1> to vector<8x128xi1>
    %189 = arith.select %188, %186, %145 : vector<8x128xi1>, vector<8x128xf32>
    %190 = vector.shape_cast %155 : vector<1x128xi1> to vector<1x128xi1>
    %191 = vector.broadcast %190 : vector<1x128xi1> to vector<8x128xi1>
    %192 = arith.select %191, %167, %148 : vector<8x128xi1>, vector<8x128xf32>
    %c4_i32_52 = arith.constant 4 : i32
    %c0_53 = arith.constant 0 : index
    %c0_54 = arith.constant 0 : index
    %193 = vector.load %arg9[%c0_53, %c0_54] : memref<8x128xf32, #tpu.memory_space<vmem>>, vector<8x128xf32>
    tpu.vector_store %arg9[%c0_53, %c0_54], %189 {strides = array<i32>} : memref<8x128xf32, #tpu.memory_space<vmem>>, vector<8x128xf32>,
    %c0_55 = arith.constant 0 : index
    %c0_56 = arith.constant 0 : index
    %194 = vector.load %arg10[%c0_55, %c0_56] : memref<1x128xf32, #tpu.memory_space<vmem>>, vector<1x128xf32>
    tpu.vector_store %arg10[%c0_55, %c0_56], %174 {strides = array<i32>} : memref<1x128xf32, #tpu.memory_space<vmem>>, vector<1x128xf32>,
    %c0_57 = arith.constant 0 : index
    %c0_58 = arith.constant 0 : index
    %195 = vector.load %arg11[%c0_57, %c0_58] : memref<8x128xf32, #tpu.memory_space<vmem>>, vector<8x128xf32>
    tpu.vector_store %arg11[%c0_57, %c0_58], %167 {strides = array<i32>} : memref<8x128xf32, #tpu.memory_space<vmem>>, vector<8x128xf32>,
    %c0_59 = arith.constant 0 : index
    %c0_60 = arith.constant 0 : index
    %196 = vector.load %arg12[%c0_59, %c0_60] : memref<8x128xf32, #tpu.memory_space<vmem>>, vector<8x128xf32>
    tpu.vector_store %arg12[%c0_59, %c0_60], %192 {strides = array<i32>} : memref<8x128xf32, #tpu.memory_space<vmem>>, vector<8x128xf32>,
    %c2_i32_61 = arith.constant 2 : i32
    %197 = arith.cmpi eq, %arg1, %c2_i32_61 : i32
    %198 = arith.extui %197 : i1 to i32
    %c0_i32_62 = arith.constant 0 : i32
    %199 = arith.cmpi ne, %198, %c0_i32_62 : i32
    scf.if %199 {
      %c0_63 = arith.constant 0 : index
      %c0_64 = arith.constant 0 : index
      %200 = vector.load %arg6[%c0_63, %c0_64] : memref<8x1xf32, #tpu.memory_space<vmem>>, vector<8x1xf32>
      %201 = vector.broadcast %200 : vector<8x1xf32> to vector<8x128xf32>
      %202 = arith.mulf %192, %201 : vector<8x128xf32>
      %cst_65 = arith.constant dense<0.000000e+00> : vector<128xf32>
      %203 = vector.multi_reduction <add>, %202, %cst_65 [0] : vector<8x128xf32> to vector<128xf32>
      %204 = vector.shape_cast %203 : vector<128xf32> to vector<1x128xf32>
      %205 = arith.addf %174, %204 : vector<1x128xf32>
      %206 = vector.broadcast %200 : vector<8x1xf32> to vector<8x128xf32>
      %207 = arith.addf %189, %206 : vector<8x128xf32>
      %cst_66 = arith.constant dense<0xFF800000> : vector<128xf32>
      %208 = vector.multi_reduction <maximumf>, %207, %cst_66 [0] : vector<8x128xf32> to vector<128xf32>
      %209 = vector.shape_cast %208 : vector<128xf32> to vector<1x128xf32>
      %210 = vector.broadcast %209 : vector<1x128xf32> to vector<8x128xf32>
      %211 = arith.subf %207, %210 : vector<8x128xf32>
      %212 = math.exp %211 : vector<8x128xf32>
      %cst_67 = arith.constant dense<0.000000e+00> : vector<128xf32>
      %213 = vector.multi_reduction <add>, %212, %cst_67 [0] : vector<8x128xf32> to vector<128xf32>
      %214 = vector.shape_cast %213 : vector<128xf32> to vector<1x128xf32>
      %215 = math.log %214 : vector<1x128xf32>
      %216 = arith.addf %215, %209 : vector<1x128xf32>
      %217 = arith.subf %205, %216 : vector<1x128xf32>
      %c0_68 = arith.constant 0 : index
      %c0_69 = arith.constant 0 : index
      %218 = vector.load %arg8[%c0_68, %c0_69] : memref<1x128xf32, #tpu.memory_space<vmem>>, vector<1x128xf32>
      tpu.vector_store %arg8[%c0_68, %c0_69], %217 {strides = array<i32>} : memref<1x128xf32, #tpu.memory_space<vmem>>, vector<1x128xf32>,
    } else {
    }
    return
  }
  func.func @transform_0(%arg0: i32, %arg1: i32) -> (i32, i32, i32) {
    %c0_i32 = arith.constant 0 : i32
    %c0_i32_0 = arith.constant 0 : i32
    return %arg1, %c0_i32, %arg0 : i32, i32, i32
  }
  func.func @transform_1(%arg0: i32, %arg1: i32) -> (i32, i32, i32) {
    %c0_i32 = arith.constant 0 : i32
    %c0_i32_0 = arith.constant 0 : i32
    return %arg1, %c0_i32, %arg0 : i32, i32, i32
  }
  func.func @transform_2(%arg0: i32, %arg1: i32) -> (i32, i32) {
    %c0_i32 = arith.constant 0 : i32
    %c0_i32_0 = arith.constant 0 : i32
    return %c0_i32, %arg0 : i32, i32
  }
  func.func @transform_3(%arg0: i32, %arg1: i32) -> (i32, i32) {
    %c0_i32 = arith.constant 0 : i32
    %c0_i32_0 = arith.constant 0 : i32
    %c0_i32_1 = arith.constant 0 : i32
    return %c0_i32, %c0_i32_0 : i32, i32
  }
  func.func @transform_4(%arg0: i32, %arg1: i32) -> (i32, i32) {
    %c0_i32 = arith.constant 0 : i32
    %c0_i32_0 = arith.constant 0 : i32
    %c0_i32_1 = arith.constant 0 : i32
    return %c0_i32, %c0_i32_0 : i32, i32
  }
  func.func @transform_5(%arg0: i32, %arg1: i32) -> (i32, i32) {
    %c0_i32 = arith.constant 0 : i32
    %c0_i32_0 = arith.constant 0 : i32
    %c0_i32_1 = arith.constant 0 : i32
    return %c0_i32, %c0_i32_0 : i32, i32
  }
  func.func @transform_6(%arg0: i32, %arg1: i32) -> (i32, i32) {
    %c0_i32 = arith.constant 0 : i32
    %c0_i32_0 = arith.constant 0 : i32
    return %c0_i32, %arg0 : i32, i32
  }
}

</mosaic_0001>

<bundles_post_ra>
// kernel: tpu_custom_call.1
= control target key start
LH: loop header
LB: loop body
LE: loop exit
PB: predicated region body
PF: predicated region fallthrough
CT: control target
= control target key end

     0   :  { %11 = vsyncpa [#allocation7], 0  ;;  %s5666_s0 = inlined_call_operand.hbm [shape: f32[12,8,128], index: 0, kind: input, shape index: {}]   ;;  %s5667_s1 = inlined_call_operand.vmem [shape: s32[12,1,128], index: 1, kind: input, shape index: {}]   ;;  %s5668_s2 = inlined_call_operand.vmem [shape: s32[1,128], index: 2, kind: input, shape index: {}]   ;;  %s5669_s3 = inlined_call_operand.vmem [shape: f32[8,1], index: 3, kind: input, shape index: {}]   ;;  %s5670_s4 = inlined_call_operand.vmem [shape: f32[8,1], index: 4, kind: input, shape index: {}]   ;;  %s5671_s5 = inlined_call_operand.vmem [shape: f32[8,8], index: 5, kind: input, shape index: {}]   ;;  %s5672_s6 = inlined_call_operand.hbm [shape: f32[1,128], index: 6, kind: output, shape index: {}]  }
   0x1   :  { %13 = vsyncpa [#allocation7 + $0x1], 0 }
   0x2   :  { %14 = vsyncpa [#allocation8], 0  ;;  %s5014_s21 = smov 0   ;;  %s5016_s22 = smov 0  }
   0x3   :  { %s5018_s23 = smov 0   ;;  %s5020_s24 = smov 0  }
   0x4   :  { %s5022_s25 = smov 0   ;;  %s5024_s26 = smov 0  }
   0x5 LB: > { %s4292_s27 = sadd.s32 4294967295, %s4966_s26   ;;  %s29_s28 = sadd.s32 1, %s4962_s25  ;;  %s4966_s26 = sphi %s5024_s26, %s20_s26   ;;  %s4962_s25 = sphi %s5022_s25, %s5700_s25   ;;  %s4958_s24 = sphi %s5020_s24, %s5699_s24   ;;  %s4954_s23 = sphi %s5018_s23, %s5698_s23   ;;  %s4950_s22 = sphi %s5016_s22, %s5697_s22   ;;  %s4946_s21 = sphi %s5014_s21, %s5696_s21  }
   0x6   : > { %p30_p0 = scmp.ge.s32.totalorder %s29_s28, 3  ;;  %s41_s29 = sadd.s32 1, %s4954_s23 }
   0x7   : > { %p48_p1 = scmp.ne.s32.totalorder %s4954_s23, %s4950_s22  ;;  %p49_p2 = scmp.eq.s32.totalorder %s4966_s26, 0 }
   0x8   : > { %s5702_s28 = smov (%p30_p0, %s29_s28), 0  ;;  %p54_p4 = scmp.ne.s32.totalorder %s4950_s22, %s4946_s21 }
   0x9   : > { %p5050_p3 = por %p49_p2, %p48_p1  ;;  %s36_s7 = ssub.s32 %s4962_s25, %s5702_s28 }
   0xa   : > { %p55_p5 = scmp.eq.s32.totalorder %s4292_s27, 0  ;;  %p39_p6 = scmp.eq.s32.totalorder %s36_s7, 0 }
   0xb   : > { %p4771_p8 = scmp.lt.s32.totalorder %s4966_s26, 3  ;;  %s236_s10 = sand.u32 1, %s4954_s23  }
   0xc   : > { %p5059_p7 = por %p55_p5, %p54_p4  ;;  %s4338_s11 = sshll.u32 %s4962_s25, 9 }
   0xd   : > { %s5065_s9 = scalar_select %p39_p6, %s4954_s23, %s41_s29  }
   0xe   : > { %s4296_s12 = sshll.u32 %s236_s10, 5  ;;  %s5072_s15 = scalar_lea.hbm %s5666_s0, %s4338_s11 }
   0xf   : > { %s240_s16 = scalar_lea.vmem [#allocation6], %s4296_s12  ;;  %p5076_p9 = pnand %p4771_p8, %p5050_p3 }
  0x10   : > { %s248_s17 = sshll.u32 %s240_s16, 4  ;;  %s5082_s19 = scalar_lea.sflag [#allocation7], %s236_s10  ;;  %s5080_s17 = int_to_ptr.vmem [resolvable:$true] %s248_s17 }
  0x11   : > { %s4856_s20 = scalar_lea.hbm %s5072_s15, 512  ;;  %p4858_p11 = pneg %p5076_p9 }
  0x12   : > { %p4857_p10 = scmp.ne.s32.totalorder %s5072_s15, %s4856_s20  ;;  %s4861_s30 = scalar_lea.hbm %s5666_s0, 1536 }
  0x13   : > { %p4862_p0 = scmp.lt.u32.totalorder %s5072_s15, %s5666_s0  ;;  %p4863_p1 = scmp.lt.u32.totalorder %s4861_s30, %s4856_s20 }
  0x14   : > { %p4859_p12 = pnand %p4858_p11, %p4857_p10  ;;  %p4865_p3 = scmp.lt.u32.totalorder %s4856_s20, %s5072_s15 }
  0x15   : > { %p4864_p2 = por %p4863_p1, %p4862_p0 }
  0x16   : > { %p4860_p13 = pneg %p4859_p12 }
  0x17   : > { %p4866_p4 = por %p4865_p3, %p4864_p2 }
  0x19   : > { %p4867_p5 = pnand %p4866_p4, %p4860_p13 }
  0x1b   : > { %4870 = shalt.err (!%p4867_p5)
}
  0x1c   : > { %s4871_s10 = scalar_lea.vmem %s5080_s17, 512  ;;  %s4968_s12 = smov [#allocation6]  }
  0x1d   : > { %p4872_p6 = scmp.ne.s32.totalorder %s5080_s17, %s4871_s10  ;;  %s4876_s13 = sshll.u32 %s4968_s12, 4  ;;  %s4877_s13 = int_to_ptr.vmem [resolvable:$false] %s4876_s13 }
  0x1e   : > { %s4878_s14 = scalar_lea.vmem %s4877_s13, 1024  ;;  %p4879_p12 = scmp.lt.s32.totalorder %s5080_s17, %s4877_s13 }
  0x1f   : > { %p4874_p8 = pnand %p4872_p6, %p4858_p11  ;;  %p4880_p0 = scmp.lt.s32.totalorder %s4878_s14, %s4871_s10 }
  0x21   : > { %p4875_p10 = pneg %p4874_p8  ;;  %p4881_p1 = por %p4880_p0, %p4879_p12 }
  0x23   : > { %p4882_p2 = pnand %p4881_p1, %p4875_p10 }
  0x25   : > { %4885 = shalt.err (!%p4882_p2)
}
  0x26   : > { %s4969_s16 = smov 128   ;;  %s4970_s20 = smov 8  }
  0x27   : > { %4770 = dma.hbm_to_vmem [thread:$0]  (!%p5076_p9), %s5072_s15, 512, %s5080_s17, %s5082_s19, %s4969_s16, %s4969_s16, %s4970_s20  }
  0x28   : > { %p4299_p11 = scmp.ge.s32.totalorder %s4966_s26, 1  ;;  %p267_p13 = scmp.lt.s32.totalorder %s4966_s26, 4 }
  0x2a   : > { %p268_p3 = pnand %p4299_p11, %p267_p13 }
  0x2b   : > { %s273_s21 = sand.u32 (!%p268_p3), 1, %s4950_s22  }
  0x2c   : > { %271 = sbr.rel (%p268_p3) target bundleno = 1560 (0x618), region = 44  ;;  %s4300_s29 = sshll.u32 (!%p268_p3), %s273_s21, 5 }
  0x2d   : > { %s274_s30 = scalar_lea.sflag (!%p268_p3), [#allocation7], %s273_s21  ;;  %s5113_s7 = scalar_lea.vmem (!%p268_p3), [#allocation6], %s4300_s29 }
  0x33   : > { %4937 = dma.done.wait (%p5059_p7), %s274_s30, 512  }
  0x34   : > { %4939 = vsyncadd (%p5059_p7), %s274_s30, 4294966784  ;;  %s5120_s11 = sshll.u32 %s4958_s24, 2  ;;  %vm324_vm0 = vcmask 64512   ;;  %v5132_v0 = vld [vmem:[%s5668_s2] sm:$0x1]  ;;  %v340_v3 = vlaneseq  ;;  %p4302_p7 = scmp.ne.s32.totalorder %s4958_s24, 0 }
  0x35   : > { %p313_p9 = scmp.lt.s32.totalorder %s5120_s11, 11  ;;  %v5137_v1 = vld [vmem:[%s5671_s5] sm:$0xff]  ;;  %v4971_v17 = vmov (!%p4302_p7), 0   ;;  %v4972_v19 = vmov (!%p4302_p7), 0.0  }
  0x36   : > { %v325_v2 = vsel %vm324_vm0, %v5137_v1, -inf  ;;  %v5141_v4 = vshrl.u32 %v340_v3, 7  ;;  %v354_v16 = vld [vmem:[%s5669_s3] sm:$0xff] (!%p4302_p7)  ;;  %4834 = vset.pattern.permute.xlu0 (!%p4302_p7), %v4971_v17 }
  0x37   : > { %s314_s15 = scalar_select %p313_p9, %s5120_s11, 11  ;;  %326 = vmax.xlane.f32.xlu0 %v325_v2 }
  0x38   : > { %v355_v21 = vld [vmem:[%s5113_s7] sm:$0xff] (!%p4302_p7) }
  0x39   : > { %s5127_s19 = scalar_lea.vmem %s5667_s1, %s314_s15 }
  0x3a   : > { %v4303_v18 = vld [vmem:[%s5127_s19] ss:$0 sm:$0xff] (!%p4302_p7) }
  0x3b   : > { %vm351_vm1 = vcmp.eq.s32.totalorder (!%p4302_p7), %v5141_v4, %v4303_v18 }
  0x3c   : > { %v4304_v20 = vsel (!%p4302_p7), %vm351_vm1, 1.0, %v4972_v19 }
  0x3d   : > { %371 = vst [vmem:[#allocation4] sm:$0xff] (!%p4302_p7), %v4304_v20  ;;  %372 = vst [vmem:[#allocation5] sm:$0xff] (!%p4302_p7), %v4304_v20 }
  0x4d   : > { %358 = vperm.xlu0 (!%p4302_p7), %4834, %v354_v16  }
  0xc4   : > { %v327_v5 = vpop.xlane.xlu0 %326 }
  0xc5   : > { %v328_v6 = vrot.slane %v327_v5, 4 }
  0xc7   : > { %v329_v7 = vmax.f32 %v327_v5, %v328_v6 }
  0xc9   : > { %v330_v8 = vrot.slane %v329_v7, 2 }
  0xcb   : > { %v331_v9 = vmax.f32 %v329_v7, %v330_v8 }
  0xcc   : > { %v359_v22 = vpop.permute.xlu0 (!%p4302_p7), %358 }
  0xcd   : > { %v332_v10 = vrot.slane %v331_v9, 1  ;;  %v361_v23 = vadd.f32 (!%p4302_p7), %v359_v22, %v355_v21 }
  0xcf   : > { %v333_v11 = vmax.f32 %v331_v9, %v332_v10  ;;  %v362_v24 = vmul.f32 (!%p4302_p7), %v4304_v20, %v361_v23  ;;  %370 = vst [vmem:[#allocation2] sm:$0xff] (!%p4302_p7), %v361_v23 }
  0xd1   : > { %4759 = vpush %v333_v11  ;;  %v363_v25 = vrot.slane (!%p4302_p7), %v362_v24, 4 }
  0xd3   : > { %v364_v26 = vadd.f32 (!%p4302_p7), %v363_v25, %v362_v24 }
  0xd5   : > { %v365_v27 = vrot.slane (!%p4302_p7), %v364_v26, 2 }
  0xd7   : > { %v366_v28 = vadd.f32 (!%p4302_p7), %v365_v27, %v364_v26 }
  0xd9   : > { %v367_v29 = vrot.slane (!%p4302_p7), %v366_v28, 1 }
  0xdb   : > { %v368_v30 = vadd.f32 (!%p4302_p7), %v367_v29, %v366_v28 }
  0xdd   : > { %369 = vst [vmem:[#allocation3] sm:$0x1] (!%p4302_p7), %v368_v30 }
 0x102   : > { %s4760_s14 = spop %4759 }
 0x103   : > { %v5143_v12 = vstv %s4760_s14 }
 0x104   : > { %v336_v13 = vsub.f32 %v5137_v1, %v5143_v12 }
 0x106   : > { %v337_v14 = vmul.f32 1.442695, %v336_v13 }
 0x108   : > { %4832 = vpow2.f32 %v337_v14 }
 0x10c   : > { %345 = sbr.rel (%p4302_p7) target bundleno = 275 (0x113), region = 52 }
 0x112   : > { %v4833_v15 = vpop.eup %4832 }
 0x113 PF: > { %v5154_v31 = vld [vmem:[#allocation2] sm:$0xff]  ;;  %v4973_v32 = vmov 0.0   ;;  %vm4974_vm2 = vmmov 0   ;;  %v864_v37 = vsel %vm324_vm0, %v4833_v15, 0  ;;  %p378_p4 = scmp.ge.s32.totalorder %s5120_s11, 1  ;;  %v379_v53 = vstv %s5120_s11  ;;  %v375_v29 = vld [vmem:[#allocation4] sm:$0xff] }
 0x114   : > { %4465 = vmatprep.subr.mxu1 %v4973_v32  ;;  %v854_v33 = vrot.slane %v5154_v31, 4  ;;  %4467 = vmatprep.mubr.msk.f32.mxu1 %vm4974_vm2, %v4973_v32  ;;  %v5165_v40 = vand.u32 4294901760, %v864_v37  ;;  %vm5205_vm3 = vcmp.lt.s32.totalorder %v379_v53, %v5132_v0  ;;  %v5218_v59 = vsub.s32 0, %v5141_v4  ;;  %v5229_v5 = vld [vmem:[%s5113_s7] sm:$0xff]  ;;  %s1324_s29 = sadd.s32 1, %s5120_s11  ;;  %s2267_s15 = sadd.s32 2, %s5120_s11 }
 0x115   : > { %4435 = vmatprep.subr.mxu0 %v4973_v32  ;;  %4437 = vmatprep.mubr.msk.f32.mxu0 %vm4974_vm2, %v4973_v32  ;;  %s381_s21 = scalar_select %p378_p4, 1, 0  ;;  %v4975_v60 = vmov 0   ;;  %v397_v25 = vsel %vm324_vm0, %v5137_v1, 0  ;;  %v1326_v53 = vstv %s1324_s29 }
 0x116   : > { %v855_v34 = vmax.f32 %v5154_v31, %v854_v33  ;;  %v5169_v43 = vsub.f32 %v864_v37, %v5165_v40  ;;  %v5273_v26 = vand.u32 4294901760, %v397_v25  ;;  %v4307_v37 = vld [vmem:[%s5127_s19] ss:$0 sm:$0xff]  ;;  %p1325_p5 = scmp.ge.s32.totalorder %s1324_s29, 1  ;;  %vm1327_vm9 = vcmp.lt.s32.totalorder %v1326_v53, %v5132_v0  ;;  %p2268_p6 = scmp.ge.s32.totalorder %s2267_s15, 1 }
 0x117   : > { %v382_v54 = vstv %s381_s21  ;;  %vm393_vm7 = vcmp.eq.s32.totalorder %v5141_v4, %v4307_v37  ;;  %s3210_s18 = sadd.s32 3, %s5120_s11  ;;  %p4333_p10 = scmp.ne.s32.totalorder %s4958_s24, 2 }
 0x118   : > { %v856_v35 = vrot.slane %v855_v34, 2  ;;  %v5172_v44 = vand.u32 4294901760, %v5169_v43  ;;  %vm5209_vm4 = vcmp.eq.s32.totalorder %v382_v54, 1  ;;  %v5276_v27 = vsub.f32 %v397_v25, %v5273_v26  ;;  %s1328_s30 = scalar_select %p1325_p5, 1, 0 }
 0x119   : > { %vm384_vm5 = vmand %vm5209_vm4, %vm5205_vm3  ;;  %s2271_s17 = scalar_select %p2268_p6, 1, 0 }
 0x11a   : > { %v857_v36 = vmax.f32 %v855_v34, %v856_v35  ;;  %v935_v45 = vsub.f32 %v5169_v43, %v5172_v44  ;;  %v385_v61 = vsel %vm384_vm5, 1, %v4975_v60  ;;  %v5279_v28 = vand.u32 4294901760, %v5276_v27  ;;  %p5513_p8 = scmp.ge.s32.totalorder %s3210_s18, 1 }
 0x11b   : > { %v1320_v2 = vrot.slane %v385_v61, %v5218_v59  ;;  %v1329_v54 = vstv %s1328_s30 }
 0x11c   : > { %v858_v38 = vrot.slane %v857_v36, 1  ;;  %v5176_v47 = vand.u32 4294901760, %v935_v45  ;;  %v468_v30 = vsub.f32 %v5276_v27, %v5279_v28  ;;  %vm1330_vm10 = vcmp.eq.s32.totalorder %v1329_v54, 1  ;;  %s3214_s11 = scalar_select %p5513_p8, 1, 0 }
 0x11d   : > { %vm5231_vm6 = vcmp.eq.s32.totalorder %v1320_v2, 1  ;;  %vm5372_vm11 = vmand %vm1330_vm10, %vm1327_vm9 }
 0x11e   : > { %v859_v39 = vmax.f32 %v857_v36, %v858_v38  ;;  %v5283_v33 = vand.u32 4294901760, %v468_v30  ;;  %v5314_v38 = vsel %vm393_vm7, 1.0, %v4973_v32 }
 0x120   : > { %v860_v41 = vsub.f32 %v5154_v31, %v859_v39  ;;  %v1314_v62 = vadd.f32 %v859_v39, %v5143_v12  ;;  %v4976_v39 = vmov 1.0  }
 0x122   : > { %v861_v42 = vmul.f32 1.442695, %v860_v41  ;;  %v1423_v41 = vsub.f32 %v5314_v38, %v5314_v38 }
 0x124   : > { %4835 = vpow2.f32 %v861_v42  ;;  %v1424_v42 = vand.u32 4294901760, %v1423_v41 }
 0x126   : > { %v1425_v45 = vsub.f32 %v1423_v41, %v1424_v42 }
 0x12e   : > { %v4836_v46 = vpop.eup %4835 }
 0x12f   : > { %v867_v48 = vand.u32 4294901760, %v4836_v46 }
 0x131   : > { %4466 = vmatpush3.msra.mxu1 %v867_v48  ;;  %v944_v49 = vsub.f32 %v4836_v46, %v867_v48  ;;  %v1426_v46 = vand.u32 4294901760, %v1425_v45 }
 0x132   : > { %4468 = vmatmul.mubr.f32.vlgmr.msra.gmra.mrb[0].mxu1 %v5176_v47  ;;  %4470 = vmatprep.subr.mxu1 %v4973_v32 }
 0x133   : > { %v945_v50 = vand.u32 4294901760, %v944_v49  ;;  %4472 = vmatprep.mubr.msk.f32.mxu1 %vm4974_vm2, %v4973_v32 }
 0x135   : > { %v946_v51 = vsub.f32 %v944_v49, %v945_v50 }
 0x137   : > { %v947_v52 = vand.u32 4294901760, %v946_v51 }
 0x139   : > { %4471 = vmatpush3.msra.mxu1 %v947_v52 }
 0x13a   : > { %4473 = vmatmul.mubr.f32.vlgmr.msra.gmra.mrb[0].mxu1 %v5165_v40  ;;  %4475 = vmatprep.subr.mxu1 %v4973_v32 }
 0x13b   : > { %4476 = vmatpush3.msra.mxu1 %v944_v49  ;;  %4477 = vmatprep.mubr.msk.f32.mxu1 %vm4974_vm2, %v4973_v32 }
 0x13c   : > { %4480 = vmatprep.subr.mxu1 %v4973_v32 }
 0x142   : > { %4478 = vmatmul.mubr.f32.vlgmr.msra.gmra.mrb[0].mxu1 %v5169_v43 }
 0x143   : > { %4481 = vmatpush3.msra.mxu1 %v867_v48  ;;  %4482 = vmatprep.mubr.msk.f32.mxu1 %vm4974_vm2, %v4973_v32 }
 0x144   : > { %4485 = vmatprep.subr.mxu1 %v4973_v32 }
 0x14a   : > { %4483 = vmatmul.mubr.f32.vlgmr.msra.gmra.mrb[0].mxu1 %v5172_v44 }
 0x14b   : > { %4486 = vmatpush3.msra.mxu1 %v945_v50  ;;  %4487 = vmatprep.mubr.msk.f32.mxu1 %vm4974_vm2, %v4973_v32 }
 0x14c   : > { %4490 = vmatprep.subr.mxu1 %v4973_v32 }
 0x152   : > { %4488 = vmatmul.mubr.f32.vlgmr.msra.gmra.mrb[0].mxu1 %v5165_v40 }
 0x153   : > { %4491 = vmatpush3.msra.mxu1 %v867_v48  ;;  %4492 = vmatprep.mubr.msk.f32.mxu1 %vm4974_vm2, %v4973_v32  ;;  %v5338_v48 = vld [vmem:[%s5127_s19 + $0x1] ss:$0 sm:$0xff] }
 0x154   : > { %4525 = vmatprep.subr.mxu1 %v4973_v32  ;;  %vm1342_vm8 = vcmp.eq.s32.totalorder %v5141_v4, %v5338_v48  ;;  %v4328_v48 = vld [vmem:[%s5127_s19 + $0x3] ss:$0 sm:$0xff] }
 0x155   : > { %v5350_v49 = vsel %vm1342_vm8, 1.0, %v4973_v32  ;;  %vm3228_vm1 = vcmp.eq.s32.totalorder %v5141_v4, %v4328_v48 }
 0x156   : > { %v2366_v50 = vsub.f32 %v5350_v49, %v5350_v49 }
 0x158   : > { %v2367_v51 = vand.u32 4294901760, %v2366_v50 }
 0x15a   : > { %4493 = vmatmul.mubr.f32.vlgmr.msra.gmra.mrb[0].mxu1 %v5165_v40  ;;  %v2368_v52 = vsub.f32 %v2366_v50, %v2367_v51 }
 0x15b   : > { %4527 = vmatprep.mubr.msk.f32.mxu1 %vm4974_vm2, %v4973_v32 }
 0x15c   : > { %v2369_v61 = vand.u32 4294901760, %v2368_v52 }
 0x22d   : > { %v1308_v55 = vpop.f32.mrb[0].mxu1 }
 0x22e   : > { %4837 = vlog2.f32 %v1308_v55  ;;  %v4494_v56 = vpop.f32.mrb[1].mxu1 }
 0x238   : > { %v4838_v63 = vpop.eup %4837 }
 0x239   : > { %v1313_v3 = vmul.f32 0.6931472, %v4838_v63  ;;  %v1332_v63 = vsel %vm5372_vm11, 1, %v4975_v60 }
 0x23b   : > { %v1315_v6 = vadd.f32 %v1314_v62, %v1313_v3  ;;  %v2263_v3 = vrot.slane %v1332_v63, %v5218_v59  ;;  %v4329_v63 = vsel %vm3228_vm1, 1.0, %v4973_v32 }
 0x23c   : > { %4155 = vst [vmem:[#allocation4] sm:$0xff] %v4329_v63 }
 0x23d   : > { %v1316_v8 = vadd.f32 %v1315_v6, %v5229_v5  ;;  %vm5392_vm12 = vcmp.eq.s32.totalorder %v2263_v3, 1 }
 0x23f   : > { %v5239_v9 = vsel %vm5231_vm6, %v1316_v8, %v5154_v31  ;;  %v400_v31 = vand.u32 4294901760, %v375_v29 }
 0x240   : > { %v1800_v10 = vrot.slane %v5239_v9, 4 }
 0x241   : > { %4436 = vmatpush3.msra.mxu0 %v400_v31  ;;  %v477_v34 = vsub.f32 %v375_v29, %v400_v31 }
 0x242   : > { %v1801_v11 = vmax.f32 %v5239_v9, %v1800_v10  ;;  %4438 = vmatmul.mubr.f32.vlgmr.msra.gmra.mrb[0].mxu0 %v5283_v33  ;;  %4440 = vmatprep.subr.mxu0 %v4973_v32  ;;  %v5387_v10 = vld [vmem:[%s5113_s7 + $0x8] sm:$0xff] }
 0x243   : > { %v478_v1 = vand.u32 4294901760, %v477_v34  ;;  %4442 = vmatprep.mubr.msk.f32.mxu0 %vm4974_vm2, %v4973_v32 }
 0x244   : > { %v1802_v13 = vrot.slane %v1801_v11, 2 }
 0x245   : > { %v479_v35 = vsub.f32 %v477_v34, %v478_v1 }
 0x246   : > { %v1803_v14 = vmax.f32 %v1801_v11, %v1802_v13 }
 0x247   : > { %v480_v36 = vand.u32 4294901760, %v479_v35 }
 0x248   : > { %v1804_v15 = vrot.slane %v1803_v14, 1 }
 0x249   : > { %4441 = vmatpush3.msra.mxu0 %v480_v36 }
 0x24a   : > { %v5243_v16 = vmax.f32 %v1803_v14, %v1804_v15  ;;  %4443 = vmatmul.mubr.f32.vlgmr.msra.gmra.mrb[0].mxu0 %v5273_v26  ;;  %4445 = vmatprep.subr.mxu0 %v4973_v32 }
 0x24b   : > { %4446 = vmatpush3.msra.mxu0 %v477_v34  ;;  %4447 = vmatprep.mubr.msk.f32.mxu0 %vm4974_vm2, %v4973_v32 }
 0x24c   : > { %v1806_v17 = vsub.f32 %v5239_v9, %v5243_v16  ;;  %4450 = vmatprep.subr.mxu0 %v4973_v32  ;;  %v2257_v8 = vadd.f32 %v5243_v16, %v5143_v12 }
 0x24e   : > { %v1807_v18 = vmul.f32 1.442695, %v1806_v17 }
 0x250   : > { %4839 = vpow2.f32 %v1807_v18 }
 0x252   : > { %4448 = vmatmul.mubr.f32.vlgmr.msra.gmra.mrb[0].mxu0 %v5276_v27 }
 0x253   : > { %4451 = vmatpush3.msra.mxu0 %v400_v31  ;;  %4452 = vmatprep.mubr.msk.f32.mxu0 %vm4974_vm2, %v4973_v32 }
 0x254   : > { %4455 = vmatprep.subr.mxu0 %v4973_v32 }
 0x25a   : > { %v4840_v19 = vpop.eup %4839  ;;  %4453 = vmatmul.mubr.f32.vlgmr.msra.gmra.mrb[0].mxu0 %v5279_v28 }
 0x25b   : > { %v1810_v20 = vand.u32 4294901760, %v4840_v19  ;;  %4456 = vmatpush3.msra.mxu0 %v478_v1  ;;  %4457 = vmatprep.mubr.msk.f32.mxu0 %vm4974_vm2, %v4973_v32 }
 0x25c   : > { %4460 = vmatprep.subr.mxu0 %v4973_v32 }
 0x25d   : > { %4526 = vmatpush3.msra.mxu1 %v1810_v20  ;;  %v1887_v21 = vsub.f32 %v4840_v19, %v1810_v20 }
 0x25e   : > { %4528 = vmatmul.mubr.f32.vlgmr.msra.gmra.mrb[2].mxu1 %v5176_v47  ;;  %4530 = vmatprep.subr.mxu1 %v4973_v32 }
 0x25f   : > { %v1888_v22 = vand.u32 4294901760, %v1887_v21  ;;  %4532 = vmatprep.mubr.msk.f32.mxu1 %vm4974_vm2, %v4973_v32 }
 0x261   : > { %v1889_v23 = vsub.f32 %v1887_v21, %v1888_v22 }
 0x262   : > { %4458 = vmatmul.mubr.f32.vlgmr.msra.gmra.mrb[0].mxu0 %v5273_v26 }
 0x263   : > { %v1890_v24 = vand.u32 4294901760, %v1889_v23  ;;  %4461 = vmatpush3.msra.mxu0 %v400_v31  ;;  %4462 = vmatprep.mubr.msk.f32.mxu0 %vm4974_vm2, %v4973_v32 }
 0x264   : > { %4495 = vmatprep.subr.mxu0 %v4973_v32 }
 0x265   : > { %4531 = vmatpush3.msra.mxu1 %v1890_v24 }
 0x266   : > { %4533 = vmatmul.mubr.f32.vlgmr.msra.gmra.mrb[2].mxu1 %v5165_v40  ;;  %4535 = vmatprep.subr.mxu1 %v4973_v32 }
 0x267   : > { %4536 = vmatpush3.msra.mxu1 %v1887_v21  ;;  %4537 = vmatprep.mubr.msk.f32.mxu1 %vm4974_vm2, %v4973_v32 }
 0x268   : > { %4540 = vmatprep.subr.mxu1 %v4973_v32 }
 0x26a   : > { %4463 = vmatmul.mubr.f32.vlgmr.msra.gmra.mrb[0].mxu0 %v5273_v26 }
 0x26b   : > { %4497 = vmatprep.mubr.msk.f32.mxu0 %vm4974_vm2, %v4973_v32  ;;  %4496 = vmatpush3.msk.msra.mxu0 %vm393_vm7, %v4976_v39 }
 0x26c   : > { %4500 = vmatprep.subr.mxu0 %v4973_v32 }
 0x26e   : > { %4538 = vmatmul.mubr.f32.vlgmr.msra.gmra.mrb[2].mxu1 %v5169_v43  ;;  %4498 = vmatmul.mubr.f32.vlgmr.msra.gmra.mrb[2].mxu0 %v5283_v33 }
 0x26f   : > { %4541 = vmatpush3.msra.mxu1 %v1810_v20  ;;  %4542 = vmatprep.mubr.msk.f32.mxu1 %vm4974_vm2, %v4973_v32 }
 0x270   : > { %4545 = vmatprep.subr.mxu1 %v4973_v32  ;;  %4502 = vmatprep.mubr.msk.f32.mxu0 %vm4974_vm2, %v4973_v32 }
 0x271   : > { %4501 = vmatpush3.msra.mxu0 %v1426_v46  ;;  %v376_v46 = vld [vmem:[#allocation5] sm:$0xff] }
 0x272   : > { %4505 = vmatprep.subr.mxu0 %v4973_v32 }
 0x276   : > { %4543 = vmatmul.mubr.f32.vlgmr.msra.gmra.mrb[2].mxu1 %v5172_v44  ;;  %4503 = vmatmul.mubr.f32.vlgmr.msra.gmra.mrb[2].mxu0 %v5273_v26 }
 0x277   : > { %4546 = vmatpush3.msra.mxu1 %v1888_v22  ;;  %4547 = vmatprep.mubr.msk.f32.mxu1 %vm4974_vm2, %v4973_v32 }
 0x278   : > { %4550 = vmatprep.subr.mxu1 %v4973_v32  ;;  %4506 = vmatpush3.msra.mxu0 %v1423_v41 }
 0x279   : > { %4507 = vmatprep.mubr.msk.f32.mxu0 %vm4974_vm2, %v4973_v32  ;;  %4510 = vmatprep.subr.mxu0 %v4973_v32 }
 0x27e   : > { %4548 = vmatmul.mubr.f32.vlgmr.msra.gmra.mrb[2].mxu1 %v5165_v40  ;;  %4508 = vmatmul.mubr.f32.vlgmr.msra.gmra.mrb[2].mxu0 %v5276_v27 }
 0x27f   : > { %4551 = vmatpush3.msra.mxu1 %v1810_v20  ;;  %4552 = vmatprep.mubr.msk.f32.mxu1 %vm4974_vm2, %v4973_v32 }
 0x280   : > { %4585 = vmatprep.subr.mxu1 %v4973_v32  ;;  %4511 = vmatpush3.msk.msra.mxu0 %vm393_vm7, %v4976_v39 }
 0x281   : > { %4512 = vmatprep.mubr.msk.f32.mxu0 %vm4974_vm2, %v4973_v32  ;;  %4515 = vmatprep.subr.mxu0 %v4973_v32 }
 0x286   : > { %4553 = vmatmul.mubr.f32.vlgmr.msra.gmra.mrb[2].mxu1 %v5165_v40  ;;  %4513 = vmatmul.mubr.f32.vlgmr.msra.gmra.mrb[2].mxu0 %v5279_v28 }
 0x287   : > { %4587 = vmatprep.mubr.msk.f32.mxu1 %vm4974_vm2, %v4973_v32  ;;  %4516 = vmatpush3.msra.mxu0 %v1424_v42 }
 0x288   : > { %4517 = vmatprep.mubr.msk.f32.mxu0 %vm4974_vm2, %v4973_v32  ;;  %4520 = vmatprep.subr.mxu0 %v4973_v32 }
 0x28e   : > { %4518 = vmatmul.mubr.f32.vlgmr.msra.gmra.mrb[2].mxu0 %v5273_v26 }
 0x28f   : > { %4521 = vmatpush3.msk.msra.mxu0 %vm393_vm7, %v4976_v39  ;;  %4522 = vmatprep.mubr.msk.f32.mxu0 %vm4974_vm2, %v4973_v32 }
 0x290   : > { %4555 = vmatprep.subr.mxu0 %v4973_v32 }
 0x296   : > { %4523 = vmatmul.mubr.f32.vlgmr.msra.gmra.mrb[2].mxu0 %v5273_v26 }
 0x297   : > { %4556 = vmatpush3.msk.msra.mxu0 %vm1342_vm8, %v4976_v39  ;;  %4557 = vmatprep.mubr.msk.f32.mxu0 %vm4974_vm2, %v4973_v32 }
 0x298   : > { %4560 = vmatprep.subr.mxu0 %v4973_v32 }
 0x29a   : > { %4558 = vmatmul.mubr.f32.vlgmr.msra.gmra.mrb[4].mxu0 %v5283_v33 }
 0x29b   : > { %4561 = vmatpush3.msra.mxu0 %v2369_v61  ;;  %4562 = vmatprep.mubr.msk.f32.mxu0 %vm4974_vm2, %v4973_v32 }
 0x29c   : > { %4565 = vmatprep.subr.mxu0 %v4973_v32 }
 0x2a2   : > { %4563 = vmatmul.mubr.f32.vlgmr.msra.gmra.mrb[4].mxu0 %v5273_v26 }
 0x2a3   : > { %4566 = vmatpush3.msra.mxu0 %v2366_v50  ;;  %4567 = vmatprep.mubr.msk.f32.mxu0 %vm4974_vm2, %v4973_v32 }
 0x2a4   : > { %4570 = vmatprep.subr.mxu0 %v4973_v32 }
 0x2aa   : > { %4568 = vmatmul.mubr.f32.vlgmr.msra.gmra.mrb[4].mxu0 %v5276_v27 }
 0x2ab   : > { %4571 = vmatpush3.msk.msra.mxu0 %vm1342_vm8, %v4976_v39  ;;  %4572 = vmatprep.mubr.msk.f32.mxu0 %vm4974_vm2, %v4973_v32 }
 0x2ac   : > { %4575 = vmatprep.subr.mxu0 %v4973_v32 }
 0x2b2   : > { %4573 = vmatmul.mubr.f32.vlgmr.msra.gmra.mrb[4].mxu0 %v5279_v28 }
 0x2b3   : > { %4576 = vmatpush3.msra.mxu0 %v2367_v51  ;;  %4577 = vmatprep.mubr.msk.f32.mxu0 %vm4974_vm2, %v4973_v32  ;;  %v3212_v51 = vstv %s3210_s18 }
 0x2b4   : > { %4580 = vmatprep.subr.mxu0 %v4973_v32  ;;  %vm3213_vm7 = vcmp.lt.s32.totalorder %v3212_v51, %v5132_v0 }
 0x2ba   : > { %4578 = vmatmul.mubr.f32.vlgmr.msra.gmra.mrb[4].mxu0 %v5273_v26 }
 0x2bb   : > { %4581 = vmatpush3.msk.msra.mxu0 %vm1342_vm8, %v4976_v39  ;;  %4582 = vmatprep.mubr.msk.f32.mxu0 %vm4974_vm2, %v4973_v32 }
 0x2bc   : > { %4615 = vmatprep.subr.mxu0 %v4973_v32 }
 0x2c2   : > { %4583 = vmatmul.mubr.f32.vlgmr.msra.gmra.mrb[4].mxu0 %v5273_v26 }
 0x2c3   : > { %4617 = vmatprep.mubr.msk.f32.mxu0 %vm4974_vm2, %v4973_v32 }
 0x359   : > { %v2251_v55 = vpop.f32.mrb[2].mxu1 }
 0x35a   : > { %4841 = vlog2.f32 %v2251_v55  ;;  %v4554_v56 = vpop.f32.mrb[3].mxu1  ;;  %v5524_v55 = vld [vmem:[%s5113_s7 + $0x10] sm:$0xff] }
 0x364   : > { %v4842_v2 = vpop.eup %4841 }
 0x365   : > { %v2256_v6 = vmul.f32 0.6931472, %v4842_v2 }
 0x367   : > { %v2258_v11 = vadd.f32 %v2257_v8, %v2256_v6 }
 0x369   : > { %v2259_v14 = vadd.f32 %v5387_v10, %v2258_v11 }
 0x36b   : > { %v5400_v15 = vsel %vm5392_vm12, %v2259_v14, %v5239_v9  ;;  %v5413_v9 = vld [vmem:[%s5127_s19 + $0x2] ss:$0 sm:$0xff] }
 0x36c   : > { %v2743_v16 = vrot.slane %v5400_v15, 4  ;;  %vm2285_vm13 = vcmp.eq.s32.totalorder %v5141_v4, %v5413_v9 }
 0x36d   : > { %v5429_v23 = vsel %vm2285_vm13, 1.0, %v4973_v32  ;;  %4616 = vmatpush3.msk.msra.mxu0 %vm2285_vm13, %v4976_v39 }
 0x36e   : > { %v2744_v17 = vmax.f32 %v5400_v15, %v2743_v16  ;;  %v3309_v25 = vsub.f32 %v5429_v23, %v5429_v23  ;;  %4620 = vmatprep.subr.mxu0 %v4973_v32  ;;  %4618 = vmatmul.mubr.f32.vlgmr.msra.gmra.mrb[6].mxu0 %v5283_v33 }
 0x36f   : > { %4622 = vmatprep.mubr.msk.f32.mxu0 %vm4974_vm2, %v4973_v32 }
 0x370   : > { %v2745_v18 = vrot.slane %v2744_v17, 2  ;;  %v3310_v29 = vand.u32 4294901760, %v3309_v25 }
 0x372   : > { %v2746_v19 = vmax.f32 %v2744_v17, %v2745_v18  ;;  %v3311_v30 = vsub.f32 %v3309_v25, %v3310_v29 }
 0x374   : > { %v2747_v20 = vrot.slane %v2746_v19, 1  ;;  %v3312_v1 = vand.u32 4294901760, %v3311_v30 }
 0x376   : > { %v5418_v21 = vmax.f32 %v2746_v19, %v2747_v20  ;;  %4621 = vmatpush3.msra.mxu0 %v3312_v1  ;;  %v374_v1 = vld [vmem:[#allocation3] sm:$0x1] }
 0x377   : > { %4625 = vmatprep.subr.mxu0 %v4973_v32  ;;  %4623 = vmatmul.mubr.f32.vlgmr.msra.gmra.mrb[6].mxu0 %v5273_v26 }
 0x378   : > { %v2749_v22 = vsub.f32 %v5400_v15, %v5418_v21  ;;  %4626 = vmatpush3.msra.mxu0 %v3309_v25  ;;  %4627 = vmatprep.mubr.msk.f32.mxu0 %vm4974_vm2, %v4973_v32 }
 0x379   : > { %4630 = vmatprep.subr.mxu0 %v4973_v32 }
 0x37a   : > { %v2750_v24 = vmul.f32 1.442695, %v2749_v22 }
 0x37c   : > { %4843 = vpow2.f32 %v2750_v24 }
 0x37f   : > { %4628 = vmatmul.mubr.f32.vlgmr.msra.gmra.mrb[6].mxu0 %v5276_v27  ;;  %v2269_v27 = vstv %s2267_s15 }
 0x380   : > { %4631 = vmatpush3.msk.msra.mxu0 %vm2285_vm13, %v4976_v39  ;;  %4632 = vmatprep.mubr.msk.f32.mxu0 %vm4974_vm2, %v4973_v32  ;;  %vm2270_vm14 = vcmp.lt.s32.totalorder %v2269_v27, %v5132_v0 }
 0x381   : > { %4635 = vmatprep.subr.mxu0 %v4973_v32 }
 0x386   : > { %v4844_v31 = vpop.eup %4843 }
 0x387   : > { %v2753_v34 = vand.u32 4294901760, %v4844_v31  ;;  %4633 = vmatmul.mubr.f32.vlgmr.msra.gmra.mrb[6].mxu0 %v5279_v28  ;;  %v2272_v28 = vstv %s2271_s17 }
 0x388   : > { %4636 = vmatpush3.msra.mxu0 %v3310_v29  ;;  %4637 = vmatprep.mubr.msk.f32.mxu0 %vm4974_vm2, %v4973_v32  ;;  %vm2273_vm15 = vcmp.eq.s32.totalorder %v2272_v28, 1 }
 0x389   : > { %4586 = vmatpush3.msra.mxu1 %v2753_v34  ;;  %v2830_v35 = vsub.f32 %v4844_v31, %v2753_v34  ;;  %4640 = vmatprep.subr.mxu0 %v4973_v32  ;;  %vm5503_vm0 = vmand %vm2273_vm15, %vm2270_vm14 }
 0x38a   : > { %4588 = vmatmul.mubr.f32.vlgmr.msra.gmra.mrb[4].mxu1 %v5176_v47  ;;  %4590 = vmatprep.subr.mxu1 %v4973_v32  ;;  %v4317_v57 = vsel %vm5503_vm0, 1.0, %v4973_v32 }
 0x38b   : > { %v2831_v36 = vand.u32 4294901760, %v2830_v35  ;;  %4592 = vmatprep.mubr.msk.f32.mxu1 %vm4974_vm2, %v4973_v32 }
 0x38d   : > { %v2832_v37 = vsub.f32 %v2830_v35, %v2831_v36 }
 0x38f   : > { %v2833_v41 = vand.u32 4294901760, %v2832_v37  ;;  %4638 = vmatmul.mubr.f32.vlgmr.msra.gmra.mrb[6].mxu0 %v5273_v26 }
 0x390   : > { %4641 = vmatpush3.msk.msra.mxu0 %vm2285_vm13, %v4976_v39  ;;  %4642 = vmatprep.mubr.msk.f32.mxu0 %vm4974_vm2, %v4973_v32  ;;  %v2275_v39 = vsel %vm5503_vm0, 1, %v4975_v60 }
 0x391   : > { %4591 = vmatpush3.msra.mxu1 %v2833_v41  ;;  %v3206_v56 = vrot.slane %v2275_v39, %v5218_v59 }
 0x392   : > { %4593 = vmatmul.mubr.f32.vlgmr.msra.gmra.mrb[4].mxu1 %v5165_v40  ;;  %4595 = vmatprep.subr.mxu1 %v4973_v32 }
 0x393   : > { %4596 = vmatpush3.msra.mxu1 %v2830_v35  ;;  %4597 = vmatprep.mubr.msk.f32.mxu1 %vm4974_vm2, %v4973_v32  ;;  %vm5537_vm8 = vcmp.eq.s32.totalorder %v3206_v56, 1  ;;  %v4309_v35 = vsel %vm5372_vm11, 1.0, %v4973_v32 }
 0x394   : > { %4600 = vmatprep.subr.mxu1 %v4973_v32 }
 0x397   : > { %4643 = vmatmul.mubr.f32.vlgmr.msra.gmra.mrb[6].mxu0 %v5273_v26  ;;  %v841_v26 = vpop.f32.mrb[0].mxu0 }
 0x398   : > { %v4675_v42 = vadd.f32 %v841_v26, %v5229_v5  ;;  %v4464_v45 = vpop.f32.mrb[1].mxu0  ;;  %v1323_v5 = vsel %vm5231_vm6, %v5314_v38, %v376_v46 }
 0x399   : > { %v1787_v50 = vpop.f32.mrb[2].mxu0  ;;  %v2266_v7 = vsel %vm5392_vm12, %v5350_v49, %v1323_v5  ;;  %v5574_v45 = vld [vmem:[%s5113_s7 + $0x18] sm:$0xff] }
 0x39a   : > { %4598 = vmatmul.mubr.f32.vlgmr.msra.gmra.mrb[4].mxu1 %v5169_v43  ;;  %v845_v52 = vmul.f32 %v4675_v42, %v5314_v38  ;;  %v4676_v53 = vadd.f32 %v5387_v10, %v1787_v50  ;;  %v4524_v54 = vpop.f32.mrb[3].mxu0  ;;  %v3215_v38 = vstv %s3214_s11  ;;  %v3209_v13 = vsel %vm5537_vm8, %v5429_v23, %v2266_v7 }
 0x39b   : > { %4601 = vmatpush3.msra.mxu1 %v2753_v34  ;;  %4602 = vmatprep.mubr.msk.f32.mxu1 %vm4974_vm2, %v4973_v32  ;;  %v2730_v61 = vpop.f32.mrb[4].mxu0  ;;  %vm3216_vm6 = vcmp.eq.s32.totalorder %v3215_v38, 1 }
 0x39c   : > { %4605 = vmatprep.subr.mxu1 %v4973_v32  ;;  %v846_v2 = vrot.slane %v845_v52, 4  ;;  %v1791_v4 = vmul.f32 %v4676_v53, %v5350_v49  ;;  %v4677_v3 = vadd.f32 %v5524_v55, %v2730_v61  ;;  %v4584_v6 = vpop.f32.mrb[5].mxu0  ;;  %vm5541_vm9 = vmand %vm3216_vm6, %vm3213_vm7 }
 0x39d   : > { %v3218_v49 = vsel %vm5541_vm9, 1, %v4975_v60 }
 0x39e   : > { %v847_v8 = vadd.f32 %v846_v2, %v845_v52  ;;  %v1792_v10 = vrot.slane %v1791_v4, 4  ;;  %v2734_v11 = vmul.f32 %v4677_v3, %v5429_v23  ;;  %v4149_v19 = vrot.slane %v3218_v49, %v5218_v59 }
 0x39f   : > { %v4306_v59 = vsel %vm384_vm5, 1.0, %v4973_v32  ;;  %v3200_v2 = vadd.f32 %v5418_v21, %v5143_v12  ;;  %v4325_v3 = vsel %vm5541_vm9, 1.0, %v4973_v32 }
 0x3a0   : > { %v848_v0 = vrot.slane %v847_v8, 2  ;;  %v1793_v17 = vadd.f32 %v1792_v10, %v1791_v4  ;;  %v2735_v18 = vrot.slane %v2734_v11, 4  ;;  %vm5552_vm10 = vcmp.eq.s32.totalorder %v4149_v19, 1 }
 0x3a1   : > { %v5558_v31 = vsel %vm5552_vm10, %v4329_v63, %v3209_v13 }
 0x3a2   : > { %4603 = vmatmul.mubr.f32.vlgmr.msra.gmra.mrb[4].mxu1 %v5172_v44  ;;  %v849_v9 = vadd.f32 %v848_v0, %v847_v8  ;;  %v1794_v20 = vrot.slane %v1793_v17, 2  ;;  %v2736_v22 = vadd.f32 %v2735_v18, %v2734_v11  ;;  %4156 = vst [vmem:[#allocation5] sm:$0xff] %v5558_v31 }
 0x3a3   : > { %4606 = vmatpush3.msra.mxu1 %v2831_v36  ;;  %4607 = vmatprep.mubr.msk.f32.mxu1 %vm4974_vm2, %v4973_v32 }
 0x3a4   : > { %4610 = vmatprep.subr.mxu1 %v4973_v32  ;;  %v850_v25 = vrot.slane %v849_v9, 1  ;;  %v1795_v29 = vadd.f32 %v1794_v20, %v1793_v17  ;;  %v2737_v30 = vrot.slane %v2736_v22, 2 }
 0x3a6   : > { %v851_v60 = vadd.f32 %v850_v25, %v849_v9  ;;  %v1796_v23 = vrot.slane %v1795_v29, 1 }
 0x3a8   : > { %v852_v36 = vmul.f32 %v4306_v59, %v851_v60  ;;  %v1797_v37 = vadd.f32 %v1796_v23, %v1795_v29 }
 0x3aa   : > { %4608 = vmatmul.mubr.f32.vlgmr.msra.gmra.mrb[4].mxu1 %v5165_v40  ;;  %v853_v58 = vadd.f32 %v852_v36, %v374_v1  ;;  %v1798_v27 = vmul.f32 %v4309_v35, %v1797_v37 }
 0x3ab   : > { %4611 = vmatpush3.msra.mxu1 %v2753_v34  ;;  %4612 = vmatprep.mubr.msk.f32.mxu1 %vm4974_vm2, %v4973_v32  ;;  %v2738_v34 = vadd.f32 %v2737_v30, %v2736_v22 }
 0x3ac   : > { %4645 = vmatprep.subr.mxu1 %v4973_v32  ;;  %v1799_v26 = vadd.f32 %v1798_v27, %v853_v58 }
 0x3ad   : > { %v2739_v41 = vrot.slane %v2738_v34, 1 }
 0x3af   : > { %v2740_v28 = vadd.f32 %v2739_v41, %v2738_v34 }
 0x3b1   : > { %v2741_v39 = vmul.f32 %v4317_v57, %v2740_v28 }
 0x3b2   : > { %4613 = vmatmul.mubr.f32.vlgmr.msra.gmra.mrb[4].mxu1 %v5165_v40 }
 0x3b3   : > { %4647 = vmatprep.mubr.msk.f32.mxu1 %vm4974_vm2, %v4973_v32  ;;  %v2742_v42 = vadd.f32 %v2741_v39, %v1799_v26 }
 0x46a   : > { %v3673_v46 = vpop.f32.mrb[6].mxu0 }
 0x46b   : > { %v4678_v62 = vadd.f32 %v5574_v45, %v3673_v46  ;;  %v4644_v50 = vpop.f32.mrb[7].mxu0 }
 0x46d   : > { %v3677_v52 = vmul.f32 %v4678_v62, %v4329_v63 }
 0x46f   : > { %v3678_v53 = vrot.slane %v3677_v52, 4 }
 0x471   : > { %v3679_v54 = vadd.f32 %v3678_v53, %v3677_v52 }
 0x473   : > { %v3680_v33 = vrot.slane %v3679_v54, 2 }
 0x475   : > { %v3681_v5 = vadd.f32 %v3680_v33, %v3679_v54 }
 0x477   : > { %v3682_v4 = vrot.slane %v3681_v5, 1 }
 0x479   : > { %v3683_v7 = vadd.f32 %v3682_v4, %v3681_v5 }
 0x47b   : > { %v3684_v8 = vmul.f32 %v4325_v3, %v3683_v7 }
 0x47d   : > { %v5586_v10 = vadd.f32 %v3684_v8, %v2742_v42 }
 0x47f   : > { %4154 = vst [vmem:[#allocation3] sm:$0x1] %v5586_v10 }
 0x485   : > { %v3194_v48 = vpop.f32.mrb[4].mxu1 }
 0x486   : > { %4845 = vlog2.f32 %v3194_v48  ;;  %v4614_v51 = vpop.f32.mrb[5].mxu1 }
 0x490   : > { %v4846_v56 = vpop.eup %4845 }
 0x491   : > { %v3199_v61 = vmul.f32 0.6931472, %v4846_v56 }
 0x493   : > { %v3201_v6 = vadd.f32 %v3200_v2, %v3199_v61 }
 0x495   : > { %v3202_v38 = vadd.f32 %v5524_v55, %v3201_v6 }
 0x497   : > { %v3208_v63 = vsel %vm5537_vm8, %v3202_v38, %v5400_v15 }
 0x498   : > { %v3686_v11 = vrot.slane %v3208_v63, 4 }
 0x49a   : > { %v3687_v21 = vmax.f32 %v3208_v63, %v3686_v11 }
 0x49c   : > { %v3688_v0 = vrot.slane %v3687_v21, 2 }
 0x49e   : > { %v3689_v17 = vmax.f32 %v3687_v21, %v3688_v0 }
 0x4a0   : > { %v3690_v18 = vrot.slane %v3689_v17, 1 }
 0x4a2   : > { %v3691_v16 = vmax.f32 %v3689_v17, %v3690_v18 }
 0x4a4   : > { %v3692_v49 = vsub.f32 %v3208_v63, %v3691_v16 }
 0x4a6   : > { %v3693_v13 = vmul.f32 1.442695, %v3692_v49 }
 0x4a8   : > { %4847 = vpow2.f32 %v3693_v13 }
 0x4b2   : > { %v4848_v19 = vpop.eup %4847 }
 0x4b3   : > { %v3696_v55 = vand.u32 4294901760, %v4848_v19 }
 0x4b5   : > { %4646 = vmatpush3.msra.mxu1 %v3696_v55  ;;  %v3773_v9 = vsub.f32 %v4848_v19, %v3696_v55 }
 0x4b6   : > { %4648 = vmatmul.mubr.f32.vlgmr.msra.gmra.mrb[6].mxu1 %v5176_v47  ;;  %4650 = vmatprep.subr.mxu1 %v4973_v32 }
 0x4b7   : > { %v3774_v15 = vand.u32 4294901760, %v3773_v9  ;;  %4652 = vmatprep.mubr.msk.f32.mxu1 %vm4974_vm2, %v4973_v32 }
 0x4b9   : > { %v3775_v14 = vsub.f32 %v3773_v9, %v3774_v15 }
 0x4bb   : > { %v3776_v20 = vand.u32 4294901760, %v3775_v14 }
 0x4bd   : > { %4651 = vmatpush3.msra.mxu1 %v3776_v20 }
 0x4be   : > { %4653 = vmatmul.mubr.f32.vlgmr.msra.gmra.mrb[6].mxu1 %v5165_v40  ;;  %4655 = vmatprep.subr.mxu1 %v4973_v32 }
 0x4bf   : > { %4656 = vmatpush3.msra.mxu1 %v3773_v9  ;;  %4657 = vmatprep.mubr.msk.f32.mxu1 %vm4974_vm2, %v4973_v32 }
 0x4c0   : > { %4660 = vmatprep.subr.mxu1 %v4973_v32 }
 0x4c6   : > { %4658 = vmatmul.mubr.f32.vlgmr.msra.gmra.mrb[6].mxu1 %v5169_v43 }
 0x4c7   : > { %4661 = vmatpush3.msra.mxu1 %v3696_v55  ;;  %4662 = vmatprep.mubr.msk.f32.mxu1 %vm4974_vm2, %v4973_v32 }
 0x4c8   : > { %4665 = vmatprep.subr.mxu1 %v4973_v32 }
 0x4ce   : > { %4663 = vmatmul.mubr.f32.vlgmr.msra.gmra.mrb[6].mxu1 %v5172_v44  ;;  %v4143_v44 = vadd.f32 %v3691_v16, %v5143_v12 }
 0x4cf   : > { %4666 = vmatpush3.msra.mxu1 %v3774_v15  ;;  %4667 = vmatprep.mubr.msk.f32.mxu1 %vm4974_vm2, %v4973_v32 }
 0x4d0   : > { %4670 = vmatprep.subr.mxu1 %v4973_v32 }
 0x4d6   : > { %4668 = vmatmul.mubr.f32.vlgmr.msra.gmra.mrb[6].mxu1 %v5165_v40 }
 0x4d7   : > { %4671 = vmatpush3.msra.mxu1 %v3696_v55  ;;  %4672 = vmatprep.mubr.msk.f32.mxu1 %vm4974_vm2, %v4973_v32  ;;  %v4161_v32 = vld [vmem:[%s5670_s4] sm:$0xff] (!%p4333_p10) }
 0x4de   : > { %4673 = vmatmul.mubr.f32.vlgmr.msra.gmra.mrb[6].mxu1 %v5165_v40  ;;  %v4977_v40 = vmov (!%p4333_p10), 0  }
 0x4df   : > { %4851 = vset.pattern.permute.xlu0 (!%p4333_p10), %v4977_v40 }
 0x4e0   : > { %4164 = vperm.xlu0 (!%p4333_p10), %4851, %v4161_v32  }
 0x55f   : > { %v4165_v60 = vpop.permute.xlu0 (!%p4333_p10), %4164 }
 0x560   : > { %v4167_v57 = vmul.f32 (!%p4333_p10), %v4165_v60, %v5558_v31 }
 0x562   : > { %v4168_v28 = vrot.slane (!%p4333_p10), %v4167_v57, 4 }
 0x564   : > { %v4169_v42 = vadd.f32 (!%p4333_p10), %v4168_v28, %v4167_v57 }
 0x566   : > { %v4170_v48 = vrot.slane (!%p4333_p10), %v4169_v42, 2 }
 0x568   : > { %v4171_v50 = vadd.f32 (!%p4333_p10), %v4170_v48, %v4169_v42 }
 0x56a   : > { %v4172_v51 = vrot.slane (!%p4333_p10), %v4171_v50, 1 }
 0x56c   : > { %v4173_v52 = vadd.f32 (!%p4333_p10), %v4172_v51, %v4171_v50 }
 0x56e   : > { %v4174_v33 = vadd.f32 (!%p4333_p10), %v4173_v52, %v5586_v10 }
 0x5b1   : > { %v4137_v43 = vpop.f32.mrb[6].mxu1 }
 0x5b2   : > { %4849 = vlog2.f32 %v4137_v43  ;;  %v4674_v47 = vpop.f32.mrb[7].mxu1 }
 0x5bc   : > { %v4850_v22 = vpop.eup %4849 }
 0x5bd   : > { %v4142_v25 = vmul.f32 0.6931472, %v4850_v22 }
 0x5be   : > { %4160 = sbr.rel (%p4333_p10) target bundleno = 1535 (0x5ff), region = 56 }
 0x5bf   : > { %v4144_v29 = vadd.f32 %v4143_v44, %v4142_v25 }
 0x5c1   : > { %v4145_v30 = vadd.f32 %v5574_v45, %v4144_v29 }
 0x5c3   : > { %v4151_v59 = vsel %vm5552_vm10, %v4145_v30, %v3208_v63 }
 0x5c4   : > { %4153 = vst [vmem:[#allocation2] sm:$0xff] %v4151_v59  ;;  %v4175_v23 = vadd.f32 (!%p4333_p10), %v4165_v60, %v4151_v59 }
 0x5c6   : > { %v4176_v12 = vrot.slane %v4175_v23, 4 }
 0x5c8   : > { %v4177_v34 = vmax.f32 %v4175_v23, %v4176_v12 }
 0x5ca   : > { %v4178_v1 = vrot.slane %v4177_v34, 2 }
 0x5cc   : > { %v4179_v35 = vmax.f32 %v4177_v34, %v4178_v1 }
 0x5ce   : > { %v4180_v36 = vrot.slane %v4179_v35, 1 }
 0x5d0   : > { %v4181_v24 = vmax.f32 %v4179_v35, %v4180_v36 }
 0x5d2   : > { %v4182_v37 = vsub.f32 %v4175_v23, %v4181_v24 }
 0x5d4   : > { %v4183_v41 = vmul.f32 1.442695, %v4182_v37 }
 0x5d6   : > { %4852 = vpow2.f32 %v4183_v41 }
 0x5e0   : > { %v4853_v58 = vpop.eup %4852 }
 0x5e1   : > { %v4185_v27 = vrot.slane %v4853_v58, 4 }
 0x5e3   : > { %v4186_v26 = vadd.f32 %v4853_v58, %v4185_v27 }
 0x5e5   : > { %v4187_v39 = vrot.slane %v4186_v26, 2 }
 0x5e7   : > { %v4188_v45 = vadd.f32 %v4187_v39, %v4186_v26 }
 0x5e9   : > { %v4189_v46 = vrot.slane %v4188_v45, 1 }
 0x5eb   : > { %v4190_v62 = vadd.f32 %v4189_v46, %v4188_v45 }
 0x5ed   : > { %4854 = vlog2.f32 %v4190_v62 }
 0x5f7   : > { %v4855_v53 = vpop.eup %4854 }
 0x5f8   : > { %v4192_v54 = vmul.f32 0.6931472, %v4855_v53 }
 0x5fa   : > { %v4193_v5 = vadd.f32 %v4192_v54, %v4181_v24 }
 0x5fc   : > { %v4194_v31 = vsub.f32 %v4174_v33, %v4193_v5 }
 0x5fe   : > { %4195 = vst [vmem:[#allocation9] sm:$0x1] %v4194_v31 }
 0x5ff PF: > { %p5622_p12 = scmp.eq.s32.totalorder %s4292_s27, 2  ;;  %s4978_s12 = smov [#allocation9]  }
 0x600   : > { %s4205_s8 = sshll.u32 %s4978_s12, 4  ;;  %s4206_s8 = int_to_ptr.vmem [resolvable:$true] %s4205_s8 }
 0x601   : > { %s4886_s13 = scalar_lea.vmem %s4206_s8, 16  ;;  %s4892_s14 = scalar_lea.vmem %s4206_s8, 32 }
 0x602   : > { %p4887_p0 = scmp.ne.s32.totalorder %s4206_s8, %s4886_s13  ;;  %p4893_p11 = scmp.lt.s32.totalorder %s4206_s8, %s4206_s8 }
 0x603   : > { %p4894_p13 = scmp.lt.s32.totalorder %s4892_s14, %s4886_s13 }
 0x604   : > { %p4888_p1 = pnand %p4887_p0, %p5622_p12 }
 0x605   : > { %p4895_p3 = por %p4894_p13, %p4893_p11 }
 0x606   : > { %p4889_p2 = pneg %p4888_p1 }
 0x608   : > { %p4896_p9 = pnand %p4895_p3, %p4889_p2 }
 0x60a   : > { %4899 = shalt.err (!%p4896_p9)
}
 0x60b   : > { %s4900_s20 = scalar_lea.hbm %s5672_s6, 16 }
 0x60c   : > { %p4901_p7 = scmp.ne.s32.totalorder %s5672_s6, %s4900_s20  ;;  %p4906_p6 = scmp.lt.u32.totalorder %s4900_s20, %s5672_s6 }
 0x60e   : > { %p4902_p4 = pnand %p4901_p7, %p5622_p12 }
 0x610   : > { %p4903_p5 = pneg %p4902_p4 }
 0x612   : > { %p4908_p8 = pnand %p4906_p6, %p4903_p5 }
 0x614   : > { %4911 = shalt.err (!%p4908_p8)
}
 0x615   : > { %4764 = dma.vmem_to_hbm [thread:$0]  (%p5622_p12), %s4206_s8, 16, %s5672_s6, [#allocation8]  }
 0x616   : > { %4941 = dma.done.wait (%p5622_p12), [#allocation8], 16  }
 0x617   : > { %4943 = vsyncadd (%p5622_p12), [#allocation8], 4294967280 }
 0x618 PF: > { %s20_s26 = sadd.s32 1, %s4966_s26   ;;  %s5696_s21 = smov %s4950_s22 }
 0x619   : > { %p17_p10 = scmp.ge.s32.totalorder %s20_s26, 5   ;;  %s5697_s22 = smov %s4954_s23 }
 0x61a   : > { %s5698_s23 = smov %s5065_s9  ;;  %s5699_s24 = smov %s4962_s25 }
 0x61b   : > { %s5700_s25 = smov %s5702_s28  ;;  %19 = sbr.rel (!%p17_p10) target bundleno = 5 (0x5), region = 102 }
 0x622   :  { %4218 = vsyncpa [#allocation7], 1 }
 0x623   :  { %4220 = vsyncpa [#allocation7 + $0x1], 1 }
 0x624   :  { %4221 = vsyncpa [#allocation8], 1 }
 0x625   :  { %4223 = vsyncpa [#allocation8 + $0x1], 1 }

</bundles_post_ra>
